<compile_context>
chip_gen: v6e
topology: v6e:2x2x1
jax: 0.10.0
libtpu: 0.0.40
codegen_flags: <defaults>
</compile_context>

<pallas_src>
import jax
import jax.numpy as jnp
from jax.experimental import pallas as pl
from jax.experimental.pallas import tpu as pltpu


def combined_head_kernel(x_ref, w1_ref, b1_ref, w2_ref, b2_ref, o_ref):
    """x_ref: (TB, 768, 64) features; o_ref: (TB, 128) padded logits."""
    # AvgPool3d((4,4,4)) over the 4*4*4 = 64 spatial positions -> (TB, 768).
    # Lane-axis reduction (64 == full last dim) -> XLU, which is otherwise idle.
    pooled = jnp.mean(x_ref[...], axis=-1)

    # Linear(768, 100->128 padded) + ReLU   (MXU matmul, f32 accumulate).
    h = jnp.dot(pooled, w1_ref[...], preferred_element_type=jnp.float32) + b1_ref[...]
    h = jnp.maximum(h, 0.0)

    # Dropout(p=0.1): identity in eval mode.
    # TODO(synk): training-mode dropout (pltpu.prng_random_bits mask) not emitted.

    # Linear(100->128, 3->128 padded); padded lanes are exactly zero.
    o_ref[...] = (
        jnp.dot(h, w2_ref[...], preferred_element_type=jnp.float32) + b2_ref[...]
    )


def combined_model_forward(feats_ncdhw, w1, b1, w2, b2):
    """feats_ncdhw: (B, 768, 4, 4, 4) float32 stage-4 SwinUNETR features.

    w1: (768, 100), b1: (100,), w2: (100, 3), b2: (3,)  (transposed nn.Linear layout).
    Returns (B, 3) logits.
    """
    B, C, D, H, W = feats_ncdhw.shape
    assert C == 768 and D == H == W == 4
    S = D * H * W  # 64

    HID_P = 128  # padded hidden width (100 -> 128)
    OUT_P = 128  # padded output width (3 -> 128), lane-dense store
    n_hidden = w1.shape[1]
    n_out = w2.shape[1]

    # Free-view reshape only (no transpose / no extra HBM round trip):
    # channels on sublanes, the 64 spatial positions on lanes.
    x = feats_ncdhw.reshape(B, C, S)

    # Zero-pad the tiny head weights to 128-lane tiles (one-time, negligible bytes).
    w1p = jnp.zeros((C, HID_P), jnp.float32).at[:, :n_hidden].set(w1)
    b1p = jnp.zeros((1, HID_P), jnp.float32).at[0, :n_hidden].set(b1)
    w2p = jnp.zeros((HID_P, OUT_P), jnp.float32).at[:n_hidden, :n_out].set(w2)
    b2p = jnp.zeros((1, OUT_P), jnp.float32).at[0, :n_out].set(b2)

    # Batch tiling: TB <= 64 keeps 2x double-buffered f32 feature blocks
    # (~24 MiB) within the raised VMEM limit on v5e/v6e/v7x.  For tiny B the
    # whole batch is a single grid step.
    TB = B if B <= 64 else 64
    Bp = pl.cdiv(B, TB) * TB
    if Bp != B:
        x = jnp.pad(x, ((0, Bp - B), (0, 0), (0, 0)))

    out = pl.pallas_call(
        combined_head_kernel,
        out_shape=jax.ShapeDtypeStruct((Bp, OUT_P), jnp.float32),
        grid=(Bp // TB,),
        in_specs=[
            pl.BlockSpec((TB, C, S), lambda i: (i, 0, 0)),   # streamed features
            pl.BlockSpec((C, HID_P), lambda i: (0, 0)),      # VMEM-resident weights
            pl.BlockSpec((1, HID_P), lambda i: (0, 0)),
            pl.BlockSpec((HID_P, OUT_P), lambda i: (0, 0)),
            pl.BlockSpec((1, OUT_P), lambda i: (0, 0)),
        ],
        out_specs=pl.BlockSpec((TB, OUT_P), lambda i: (i, 0)),
        compiler_params=pltpu.CompilerParams(
            dimension_semantics=("parallel",),
            vmem_limit_bytes=48 * 1024 * 1024,
        ),
    )(x, w1p, b1p, w2p, b2p)

    # Drop batch padding and the zero-padded output lanes.
    return out[:B, :n_out]


def init_classifier_params(key):
    """Deterministic synthetic weights matching Classifier's shapes.

    PyTorch nn.Linear(in, out) stores weight (out, in) and computes x @ W.T;
    we store the transposed (in, out) layout directly.
    """
    k1, k2, k3, k4 = jax.random.split(key, 4)
    w1 = jax.random.normal(k1, (768, 100), jnp.float32) * 0.02
    b1 = jax.random.normal(k2, (100,), jnp.float32) * 0.02
    w2 = jax.random.normal(k3, (100, 3), jnp.float32) * 0.02
    b2 = jax.random.normal(k4, (3,), jnp.float32) * 0.02
    return w1, b1, w2, b2


def reference_forward(feats_ncdhw, w1, b1, w2, b2):
    """Pure-JAX reference of the same computation (for a correctness check)."""
    B = feats_ncdhw.shape[0]
    pooled = jnp.mean(feats_ncdhw.reshape(B, 768, 64), axis=-1)  # AvgPool3d(4,4,4)
    h = jnp.maximum(pooled @ w1 + b1, 0.0)
    return h @ w2 + b2


if __name__ == "__main__":
    key = jax.random.PRNGKey(0)
    k_feat, k_params = jax.random.split(key)

    # Small example: batch=2 stage-4 feature maps (B, 768, 4, 4, 4).
    feats = jax.random.normal(k_feat, (2, 768, 4, 4, 4), jnp.float32)
    w1, b1, w2, b2 = init_classifier_params(k_params)

    logits = combined_model_forward(feats, w1, b1, w2, b2)
    logits = jax.block_until_ready(logits)

    ref = reference_forward(feats, w1, b1, w2, b2)
    assert logits.shape == (2, 3)
    assert jnp.allclose(logits, ref, atol=1e-4, rtol=1e-4)

    print("KERNEL_OK")
</pallas_src>

<mosaic_0001>
module attributes {stable_mosaic.version = 11 : i64} {
  func.func @combined_head_kernel(%arg0: i32, %arg1: memref<2x768x64xf32, #tpu.memory_space<vmem>>, %arg2: memref<768x128xf32, #tpu.memory_space<vmem>>, %arg3: memref<1x128xf32, #tpu.memory_space<vmem>>, %arg4: memref<128x128xf32, #tpu.memory_space<vmem>>, %arg5: memref<1x128xf32, #tpu.memory_space<vmem>>, %arg6: memref<2x128xf32, #tpu.memory_space<vmem>>) attributes {dimension_semantics = [#tpu.dimension_semantics<parallel>], iteration_bounds = array<i64: 1>, scalar_prefetch = 0 : i64, scratch_operands = 0 : i64, tpu.core_type = #tpu.core_type<tc>, window_params = [{transform_indices = @transform_0, window_bounds = array<i64: 2, 768, 64>}, {pipeline_mode = #tpu.pipeline_mode<synchronous>, transform_indices = @transform_1, window_bounds = array<i64: 768, 128>}, {pipeline_mode = #tpu.pipeline_mode<synchronous>, transform_indices = @transform_2, window_bounds = array<i64: 1, 128>}, {pipeline_mode = #tpu.pipeline_mode<synchronous>, transform_indices = @transform_3, window_bounds = array<i64: 128, 128>}, {pipeline_mode = #tpu.pipeline_mode<synchronous>, transform_indices = @transform_4, window_bounds = array<i64: 1, 128>}, {transform_indices = @transform_5, window_bounds = array<i64: 2, 128>}]} {
    %c0 = arith.constant 0 : index
    %c0_0 = arith.constant 0 : index
    %c0_1 = arith.constant 0 : index
    %0 = vector.load %arg1[%c0, %c0_0, %c0_1] : memref<2x768x64xf32, #tpu.memory_space<vmem>>, vector<2x768x64xf32>
    %cst = arith.constant dense<0.000000e+00> : vector<2x768xf32>
    %1 = vector.multi_reduction <add>, %0, %cst [2] : vector<2x768x64xf32> to vector<2x768xf32>
    %cst_2 = arith.constant 6.400000e+01 : f32
    %2 = vector.broadcast %cst_2 : f32 to vector<2x768xf32>
    %3 = arith.divf %1, %2 : vector<2x768xf32>
    %c0_3 = arith.constant 0 : index
    %c0_4 = arith.constant 0 : index
    %4 = vector.load %arg2[%c0_3, %c0_4] : memref<768x128xf32, #tpu.memory_space<vmem>>, vector<768x128xf32>
    %cst_5 = arith.constant dense<0.000000e+00> : vector<2x128xf32>
    %5 = tpu.matmul %3, %4, %cst_5 {dimension_numbers = #tpu.dot_dimension_numbers<[1], [0], [0], [1], [0, 0, 1, 1], [], []>} : vector<2x768xf32>, vector<768x128xf32>, vector<2x128xf32> -> vector<2x128xf32>
    %c0_6 = arith.constant 0 : index
    %c0_7 = arith.constant 0 : index
    %6 = vector.load %arg3[%c0_6, %c0_7] : memref<1x128xf32, #tpu.memory_space<vmem>>, vector<1x128xf32>
    %7 = vector.broadcast %6 : vector<1x128xf32> to vector<2x128xf32>
    %8 = arith.addf %5, %7 : vector<2x128xf32>
    %cst_8 = arith.constant 0.000000e+00 : f32
    %9 = vector.broadcast %cst_8 : f32 to vector<2x128xf32>
    %10 = arith.maximumf %8, %9 : vector<2x128xf32>
    %c0_9 = arith.constant 0 : index
    %c0_10 = arith.constant 0 : index
    %11 = vector.load %arg4[%c0_9, %c0_10] : memref<128x128xf32, #tpu.memory_space<vmem>>, vector<128x128xf32>
    %cst_11 = arith.constant dense<0.000000e+00> : vector<2x128xf32>
    %12 = tpu.matmul %10, %11, %cst_11 {dimension_numbers = #tpu.dot_dimension_numbers<[1], [0], [0], [1], [0, 0, 1, 1], [], []>} : vector<2x128xf32>, vector<128x128xf32>, vector<2x128xf32> -> vector<2x128xf32>
    %c0_12 = arith.constant 0 : index
    %c0_13 = arith.constant 0 : index
    %13 = vector.load %arg5[%c0_12, %c0_13] : memref<1x128xf32, #tpu.memory_space<vmem>>, vector<1x128xf32>
    %14 = vector.broadcast %13 : vector<1x128xf32> to vector<2x128xf32>
    %15 = arith.addf %12, %14 : vector<2x128xf32>
    %c0_14 = arith.constant 0 : index
    %c0_15 = arith.constant 0 : index
    %16 = vector.load %arg6[%c0_14, %c0_15] : memref<2x128xf32, #tpu.memory_space<vmem>>, vector<2x128xf32>
    tpu.vector_store %arg6[%c0_14, %c0_15], %15 {strides = array<i32>} : memref<2x128xf32, #tpu.memory_space<vmem>>, vector<2x128xf32>,
    return
  }
  func.func @transform_0(%arg0: i32) -> (i32, i32, i32) {
    %c0_i32 = arith.constant 0 : i32
    %c0_i32_0 = arith.constant 0 : i32
    %c0_i32_1 = arith.constant 0 : i32
    return %arg0, %c0_i32, %c0_i32_0 : i32, i32, i32
  }
  func.func @transform_1(%arg0: i32) -> (i32, i32) {
    %c0_i32 = arith.constant 0 : i32
    %c0_i32_0 = arith.constant 0 : i32
    %c0_i32_1 = arith.constant 0 : i32
    return %c0_i32, %c0_i32_0 : i32, i32
  }
  func.func @transform_2(%arg0: i32) -> (i32, i32) {
    %c0_i32 = arith.constant 0 : i32
    %c0_i32_0 = arith.constant 0 : i32
    %c0_i32_1 = arith.constant 0 : i32
    return %c0_i32, %c0_i32_0 : i32, i32
  }
  func.func @transform_3(%arg0: i32) -> (i32, i32) {
    %c0_i32 = arith.constant 0 : i32
    %c0_i32_0 = arith.constant 0 : i32
    %c0_i32_1 = arith.constant 0 : i32
    return %c0_i32, %c0_i32_0 : i32, i32
  }
  func.func @transform_4(%arg0: i32) -> (i32, i32) {
    %c0_i32 = arith.constant 0 : i32
    %c0_i32_0 = arith.constant 0 : i32
    %c0_i32_1 = arith.constant 0 : i32
    return %c0_i32, %c0_i32_0 : i32, i32
  }
  func.func @transform_5(%arg0: i32) -> (i32, i32) {
    %c0_i32 = arith.constant 0 : i32
    %c0_i32_0 = arith.constant 0 : i32
    return %arg0, %c0_i32 : i32, i32
  }
}

</mosaic_0001>

<bundles_post_ra>
// kernel: tpu_custom_call.1
= control target key start
LH: loop header
LB: loop body
LE: loop exit
PB: predicated region body
PF: predicated region fallthrough
CT: control target
= control target key end

     0   :  { %vm213_vm0 = vcmask 523264   ;;  %s4671_s0 = inlined_call_operand.vmem [shape: f32[2,768,64], index: 0, kind: input, shape index: {}]   ;;  %s4672_s1 = inlined_call_operand.vmem [shape: f32[768,128], index: 1, kind: input, shape index: {}]   ;;  %s4673_s2 = inlined_call_operand.vmem [shape: f32[1,128], index: 2, kind: input, shape index: {}]   ;;  %s4674_s3 = inlined_call_operand.vmem [shape: f32[128,128], index: 3, kind: input, shape index: {}]   ;;  %s4675_s4 = inlined_call_operand.vmem [shape: f32[1,128], index: 4, kind: input, shape index: {}]   ;;  %s4676_s5 = inlined_call_operand.hbm [shape: f32[2,128], index: 5, kind: output, shape index: {}]  }
   0x1   :  { %v133_v0 = vld [vmem:[%s4671_s0 + $0x380] sm:$0xff]  ;;  %v134_v2 = vld [vmem:[%s4671_s0 + $0x388] sm:$0xff]  ;;  %v39_v13 = vld [vmem:[%s4671_s0 + $0x90] sm:$0xff] }
   0x2   :  { %v37_v1 = vld [vmem:[%s4671_s0 + $0x80] sm:$0xff]  ;;  %v550_v3 = vsel %vm213_vm0, %v133_v0, 0.0  ;;  %v38_v5 = vld [vmem:[%s4671_s0 + $0x88] sm:$0xff]  ;;  %v553_v6 = vsel %vm213_vm0, %v134_v2, 0.0  ;;  %v268_v15 = vsel %vm213_vm0, %v39_v13, 0.0  ;;  %v135_v16 = vld [vmem:[%s4671_s0 + $0x390] sm:$0xff] }
   0x3   :  { %v262_v4 = vsel %vm213_vm0, %v37_v1, 0.0  ;;  %551 = vadd.xlane.f32.xlu1 %v550_v3  ;;  %v265_v7 = vsel %vm213_vm0, %v38_v5, 0.0  ;;  %v22_v8 = vld [vmem:[%s4671_s0 + $0x8] sm:$0xff]  ;;  %v21_v9 = vld [vmem:[%s4671_s0] sm:$0xff]  ;;  %v556_v18 = vsel %vm213_vm0, %v135_v16, 0.0  ;;  %v40_v20 = vld [vmem:[%s4671_s0 + $0x98] sm:$0xff] }
   0x4   :  { %263 = vadd.xlane.f32.xlu0 %v262_v4  ;;  %v217_v10 = vsel %vm213_vm0, %v22_v8, 0.0  ;;  %v214_v11 = vsel %vm213_vm0, %v21_v9, 0.0  ;;  %v117_v12 = vld [vmem:[%s4671_s0 + $0x300] sm:$0xff]  ;;  %v118_v17 = vld [vmem:[%s4671_s0 + $0x308] sm:$0xff]  ;;  %v23_v21 = vld [vmem:[%s4671_s0 + $0x10] sm:$0xff]  ;;  %v271_v22 = vsel %vm213_vm0, %v40_v20, 0.0 }
   0x5   :  { %v502_v14 = vsel %vm213_vm0, %v117_v12, 0.0  ;;  %v505_v19 = vsel %vm213_vm0, %v118_v17, 0.0  ;;  %v220_v23 = vsel %vm213_vm0, %v23_v21, 0.0  ;;  %v136_v24 = vld [vmem:[%s4671_s0 + $0x398] sm:$0xff]  ;;  %v119_v25 = vld [vmem:[%s4671_s0 + $0x310] sm:$0xff]  ;;  %v41_v28 = vld [vmem:[%s4671_s0 + $0xa0] sm:$0xff] }
   0x6   :  { %v559_v26 = vsel %vm213_vm0, %v136_v24, 0.0  ;;  %v508_v27 = vsel %vm213_vm0, %v119_v25, 0.0  ;;  %v24_v29 = vld [vmem:[%s4671_s0 + $0x18] sm:$0xff]  ;;  %v274_v30 = vsel %vm213_vm0, %v41_v28, 0.0 }
   0x7   :  { %554 = vadd.xlane.f32.xlu1 %v553_v6  ;;  %v223_v31 = vsel %vm213_vm0, %v24_v29, 0.0 }
   0x8   :  { %266 = vadd.xlane.f32.xlu0 %v265_v7 }
   0xb   :  { %218 = vadd.xlane.f32.xlu1 %v217_v10 }
   0xc   :  { %215 = vadd.xlane.f32.xlu0 %v214_v11 }
   0xf   :  { %503 = vadd.xlane.f32.xlu1 %v502_v14 }
  0x10   :  { %269 = vadd.xlane.f32.xlu0 %v268_v15 }
  0x13   :  { %557 = vadd.xlane.f32.xlu1 %v556_v18 }
  0x14   :  { %506 = vadd.xlane.f32.xlu0 %v505_v19 }
  0x17   :  { %272 = vadd.xlane.f32.xlu1 %v271_v22 }
  0x18   :  { %221 = vadd.xlane.f32.xlu0 %v220_v23 }
  0x1b   :  { %560 = vadd.xlane.f32.xlu1 %v559_v26 }
  0x1c   :  { %509 = vadd.xlane.f32.xlu0 %v508_v27 }
  0x1d   :  { %10 = vsyncpa [#allocation3], 0  ;;  %v137_v32 = vld [vmem:[%s4671_s0 + $0x3a0] sm:$0xff]  ;;  %v120_v33 = vld [vmem:[%s4671_s0 + $0x318] sm:$0xff]  ;;  %vm1289_vm1 = vcmask 130112   ;;  %vm1296_vm2 = vcmask 195712  }
  0x1e   :  { %v562_v34 = vsel %vm213_vm0, %v137_v32, 0.0  ;;  %v511_v35 = vsel %vm213_vm0, %v120_v33, 0.0  ;;  %v42_v36 = vld [vmem:[%s4671_s0 + $0xa8] sm:$0xff]  ;;  %v25_v37 = vld [vmem:[%s4671_s0 + $0x20] sm:$0xff]  ;;  %v43_v44 = vld [vmem:[%s4671_s0 + $0xb0] sm:$0xff]  ;;  %vm1303_vm3 = vcmask 261312  }
  0x1f   :  { %275 = vadd.xlane.f32.xlu1 %v274_v30  ;;  %v277_v38 = vsel %vm213_vm0, %v42_v36, 0.0  ;;  %v226_v39 = vsel %vm213_vm0, %v25_v37, 0.0  ;;  %v138_v40 = vld [vmem:[%s4671_s0 + $0x3a8] sm:$0xff]  ;;  %v121_v41 = vld [vmem:[%s4671_s0 + $0x320] sm:$0xff]  ;;  %v280_v46 = vsel %vm213_vm0, %v43_v44, 0.0  ;;  %v139_v48 = vld [vmem:[%s4671_s0 + $0x3b0] sm:$0xff] }
  0x20   :  { %224 = vadd.xlane.f32.xlu0 %v223_v31  ;;  %v565_v42 = vsel %vm213_vm0, %v138_v40, 0.0  ;;  %v514_v43 = vsel %vm213_vm0, %v121_v41, 0.0  ;;  %v26_v45 = vld [vmem:[%s4671_s0 + $0x28] sm:$0xff]  ;;  %v568_v50 = vsel %vm213_vm0, %v139_v48, 0.0  ;;  %v44_v52 = vld [vmem:[%s4671_s0 + $0xb8] sm:$0xff]  ;;  %v27_v53 = vld [vmem:[%s4671_s0 + $0x30] sm:$0xff] }
  0x21   :  { %v229_v47 = vsel %vm213_vm0, %v26_v45, 0.0  ;;  %v122_v49 = vld [vmem:[%s4671_s0 + $0x328] sm:$0xff]  ;;  %v283_v54 = vsel %vm213_vm0, %v44_v52, 0.0  ;;  %v232_v55 = vsel %vm213_vm0, %v27_v53, 0.0  ;;  %v140_v56 = vld [vmem:[%s4671_s0 + $0x3b8] sm:$0xff]  ;;  %v123_v57 = vld [vmem:[%s4671_s0 + $0x330] sm:$0xff] }
  0x22   :  { %v517_v51 = vsel %vm213_vm0, %v122_v49, 0.0  ;;  %v571_v58 = vsel %vm213_vm0, %v140_v56, 0.0  ;;  %v520_v59 = vsel %vm213_vm0, %v123_v57, 0.0  ;;  %v45_v60 = vld [vmem:[%s4671_s0 + $0xc0] sm:$0xff]  ;;  %v28_v61 = vld [vmem:[%s4671_s0 + $0x38] sm:$0xff]  ;;  %v46_v4 = vld [vmem:[%s4671_s0 + $0xc8] sm:$0xff] }
  0x23   :  { %563 = vadd.xlane.f32.xlu1 %v562_v34  ;;  %v286_v62 = vsel %vm213_vm0, %v45_v60, 0.0  ;;  %v235_v63 = vsel %vm213_vm0, %v28_v61, 0.0  ;;  %v141_v0 = vld [vmem:[%s4671_s0 + $0x3c0] sm:$0xff]  ;;  %v124_v1 = vld [vmem:[%s4671_s0 + $0x338] sm:$0xff]  ;;  %v289_v6 = vsel %vm213_vm0, %v46_v4, 0.0  ;;  %v142_v8 = vld [vmem:[%s4671_s0 + $0x3c8] sm:$0xff] }
  0x24   :  { %512 = vadd.xlane.f32.xlu0 %v511_v35  ;;  %v574_v2 = vsel %vm213_vm0, %v141_v0, 0.0  ;;  %v523_v3 = vsel %vm213_vm0, %v124_v1, 0.0  ;;  %v29_v5 = vld [vmem:[%s4671_s0 + $0x40] sm:$0xff]  ;;  %v577_v10 = vsel %vm213_vm0, %v142_v8, 0.0  ;;  %v47_v12 = vld [vmem:[%s4671_s0 + $0xd0] sm:$0xff]  ;;  %v30_v13 = vld [vmem:[%s4671_s0 + $0x48] sm:$0xff] }
  0x25   :  { %v238_v7 = vsel %vm213_vm0, %v29_v5, 0.0  ;;  %v125_v9 = vld [vmem:[%s4671_s0 + $0x340] sm:$0xff]  ;;  %v292_v14 = vsel %vm213_vm0, %v47_v12, 0.0  ;;  %v241_v15 = vsel %vm213_vm0, %v30_v13, 0.0  ;;  %v143_v16 = vld [vmem:[%s4671_s0 + $0x3d0] sm:$0xff]  ;;  %v126_v17 = vld [vmem:[%s4671_s0 + $0x348] sm:$0xff] }
  0x26   :  { %v526_v11 = vsel %vm213_vm0, %v125_v9, 0.0  ;;  %v580_v18 = vsel %vm213_vm0, %v143_v16, 0.0  ;;  %v529_v19 = vsel %vm213_vm0, %v126_v17, 0.0  ;;  %v48_v20 = vld [vmem:[%s4671_s0 + $0xd8] sm:$0xff]  ;;  %v31_v21 = vld [vmem:[%s4671_s0 + $0x50] sm:$0xff]  ;;  %v49_v28 = vld [vmem:[%s4671_s0 + $0xe0] sm:$0xff] }
  0x27   :  { %278 = vadd.xlane.f32.xlu1 %v277_v38  ;;  %v295_v22 = vsel %vm213_vm0, %v48_v20, 0.0  ;;  %v244_v23 = vsel %vm213_vm0, %v31_v21, 0.0  ;;  %v144_v24 = vld [vmem:[%s4671_s0 + $0x3d8] sm:$0xff]  ;;  %v127_v25 = vld [vmem:[%s4671_s0 + $0x350] sm:$0xff]  ;;  %v298_v30 = vsel %vm213_vm0, %v49_v28, 0.0  ;;  %v145_v32 = vld [vmem:[%s4671_s0 + $0x3e0] sm:$0xff]  ;;  %v1278_v28 = vlaneseq }
  0x28   :  { %227 = vadd.xlane.f32.xlu0 %v226_v39  ;;  %v583_v26 = vsel %vm213_vm0, %v144_v24, 0.0  ;;  %v532_v27 = vsel %vm213_vm0, %v127_v25, 0.0  ;;  %v32_v29 = vld [vmem:[%s4671_s0 + $0x58] sm:$0xff]  ;;  %v586_v34 = vsel %vm213_vm0, %v145_v32, 0.0  ;;  %v50_v36 = vld [vmem:[%s4671_s0 + $0xe8] sm:$0xff]  ;;  %v33_v37 = vld [vmem:[%s4671_s0 + $0x60] sm:$0xff] }
  0x29   :  { %v247_v31 = vsel %vm213_vm0, %v32_v29, 0.0  ;;  %v128_v33 = vld [vmem:[%s4671_s0 + $0x358] sm:$0xff]  ;;  %v301_v38 = vsel %vm213_vm0, %v50_v36, 0.0  ;;  %v250_v39 = vsel %vm213_vm0, %v33_v37, 0.0  ;;  %v146_v40 = vld [vmem:[%s4671_s0 + $0x3e8] sm:$0xff]  ;;  %v129_v41 = vld [vmem:[%s4671_s0 + $0x360] sm:$0xff] }
  0x2a   :  { %v535_v35 = vsel %vm213_vm0, %v128_v33, 0.0  ;;  %v51_v44 = vld [vmem:[%s4671_s0 + $0xf0] sm:$0xff]  ;;  %v34_v45 = vld [vmem:[%s4671_s0 + $0x68] sm:$0xff]  ;;  %v1011_v0 = vld [vmem:[%s4672_s1 + $0xe0] sm:$0xff]  ;;  %vm1310_vm4 = vcmask 326912   ;;  %vm1317_vm5 = vcmask 392512  }
  0x2b   :  { %566 = vadd.xlane.f32.xlu1 %v565_v42  ;;  %v589_v42 = vsel %vm213_vm0, %v146_v40, 0.0  ;;  %v147_v48 = vld [vmem:[%s4671_s0 + $0x3f0] sm:$0xff]  ;;  %v130_v49 = vld [vmem:[%s4671_s0 + $0x368] sm:$0xff]  ;;  %v995_v1 = vld [vmem:[%s4672_s1 + $0x60] sm:$0xff]  ;;  %vm1324_vm6 = vcmask 458112   ;;  %vm1331_vm7 = vcmask 523712  }
  0x2c   :  { %515 = vadd.xlane.f32.xlu0 %v514_v43  ;;  %v538_v43 = vsel %vm213_vm0, %v129_v41, 0.0  ;;  %v592_v52 = vsel %vm213_vm0, %v147_v48, 0.0  ;;  %v541_v53 = vsel %vm213_vm0, %v130_v49, 0.0  ;;  %v35_v56 = vld [vmem:[%s4671_s0 + $0x70] sm:$0xff]  ;;  %v132_v5 = vld [vmem:[%s4671_s0 + $0x378] sm:$0xff]  ;;  %v70_v12 = vld [vmem:[%s4671_s0 + $0x188] sm:$0xff] }
  0x2d   :  { %v997_v57 = vld [vmem:[%s4672_s1 + $0x70] sm:$0xff]  ;;  %v256_v61 = vsel %vm213_vm0, %v35_v56, 0.0  ;;  %v69_v13 = vld [vmem:[%s4671_s0 + $0x180] sm:$0xff]  ;;  %v361_v17 = vsel %vm213_vm0, %v70_v12, 0.0  ;;  %v988_v37 = vld [vmem:[%s4672_s1 + $0x28] sm:$0xff]  ;;  %vm4685_vm8 = vcmask 589312  }
  0x2e   :  { %v1009_v8 = vld [vmem:[%s4672_s1 + $0xd0] sm:$0xff]  ;;  %v1007_v16 = vld [vmem:[%s4672_s1 + $0xc0] sm:$0xff]  ;;  %v1002_v48 = vld [vmem:[%s4672_s1 + $0x98] sm:$0xff]  ;;  %vm1345_vm9 = vcmask 654912   ;;  %vm1352_vm10 = vcmask 720512   ;;  %vm1359_vm11 = vcmask 786112  }
  0x2f   :  { %281 = vadd.xlane.f32.xlu1 %v280_v46  ;;  %v304_v46 = vsel %vm213_vm0, %v51_v44, 0.0  ;;  %v993_v9 = vld [vmem:[%s4672_s1 + $0x50] sm:$0xff]  ;;  %v165_v20 = vld [vmem:[%s4671_s0 + $0x480] sm:$0xff]  ;;  %vm1366_vm12 = vcmask 851712   ;;  %vm1373_vm13 = vcmask 917312   ;;  %vm1380_vm14 = vcmask 982912  }
  0x30   :  { %230 = vadd.xlane.f32.xlu0 %v229_v47  ;;  %v253_v47 = vsel %vm213_vm0, %v34_v45, 0.0  ;;  %v991_v21 = vld [vmem:[%s4672_s1 + $0x40] sm:$0xff]  ;;  %v646_v25 = vsel %vm213_vm0, %v165_v20, 0.0  ;;  %v1005_v29 = vld [vmem:[%s4672_s1 + $0xb0] sm:$0xff]  ;;  %vm1387_vm15 = vcmask 1048512   ;;  %s2776_s23 = smov [#allocation2]  }
  0x31   :  { %v71_v36 = vld [vmem:[%s4671_s0 + $0x190] sm:$0xff]  ;;  %v987_v41 = vld [vmem:[%s4672_s1 + $0x20] sm:$0xff]  ;;  %s2582_s24 = sshll.u32 %s2776_s23, 4  ;;  %s2583_s24 = int_to_ptr.vmem [resolvable:$true] %s2582_s24 }
  0x32   :  { %v364_v45 = vsel %vm213_vm0, %v71_v36, 0.0  ;;  %p2757_p1 = scmp.lt.s32.totalorder %s2583_s24, %s2583_s24 }
  0x33   :  { %569 = vadd.xlane.f32.xlu1 %v568_v50  ;;  %v1014_v50 = vld [vmem:[%s4672_s1 + $0xf8] sm:$0xff] }
  0x34   :  { %518 = vadd.xlane.f32.xlu0 %v517_v51  ;;  %v998_v51 = vld [vmem:[%s4672_s1 + $0x78] sm:$0xff]  ;;  %2592 = vmatprep.subr.mxu0 %v1014_v50 }
  0x35   :  { %2593 = vmatpush3.msra.mxu0 %v998_v51  ;;  %v986_v51 = vld [vmem:[%s4672_s1 + $0x18] sm:$0xff] }
  0x37   :  { %284 = vadd.xlane.f32.xlu1 %v283_v54  ;;  %v1013_v54 = vld [vmem:[%s4672_s1 + $0xf0] sm:$0xff] }
  0x38   :  { %233 = vadd.xlane.f32.xlu0 %v232_v55  ;;  %v52_v55 = vld [vmem:[%s4671_s0 + $0xf8] sm:$0xff]  ;;  %2594 = vmatprep.subr.mxu0 %v1013_v54  ;;  %v1001_v54 = vld [vmem:[%s4672_s1 + $0x90] sm:$0xff] }
  0x39   :  { %v307_v60 = vsel %vm213_vm0, %v52_v55, 0.0  ;;  %2595 = vmatpush3.msra.mxu0 %v997_v57 }
  0x3b   :  { %572 = vadd.xlane.f32.xlu1 %v571_v58  ;;  %v1012_v58 = vld [vmem:[%s4672_s1 + $0xe8] sm:$0xff] }
  0x3c   :  { %521 = vadd.xlane.f32.xlu0 %v520_v59  ;;  %v996_v59 = vld [vmem:[%s4672_s1 + $0x68] sm:$0xff]  ;;  %2596 = vmatprep.subr.mxu0 %v1012_v58 }
  0x3d   :  { %2597 = vmatpush3.msra.mxu0 %v996_v59 }
  0x3e   :  { %2598 = vmatprep.subr.mxu0 %v1011_v0 }
  0x3f   :  { %287 = vadd.xlane.f32.xlu1 %v286_v62  ;;  %v148_v62 = vld [vmem:[%s4671_s0 + $0x3f8] sm:$0xff]  ;;  %2599 = vmatpush3.msra.mxu0 %v995_v1  ;;  %v1000_v1 = vld [vmem:[%s4672_s1 + $0x88] sm:$0xff] }
  0x40   :  { %236 = vadd.xlane.f32.xlu0 %v235_v63  ;;  %v131_v63 = vld [vmem:[%s4671_s0 + $0x370] sm:$0xff] }
  0x41   :  { %v544_v4 = vsel %vm213_vm0, %v131_v63, 0.0  ;;  %v985_v63 = vld [vmem:[%s4672_s1 + $0x10] sm:$0xff] }
  0x43   :  { %575 = vadd.xlane.f32.xlu1 %v574_v2  ;;  %v1010_v2 = vld [vmem:[%s4672_s1 + $0xd8] sm:$0xff] }
  0x44   :  { %524 = vadd.xlane.f32.xlu0 %v523_v3  ;;  %v595_v3 = vsel %vm213_vm0, %v148_v62, 0.0  ;;  %2600 = vmatprep.subr.mxu0 %v1010_v2  ;;  %v55_v62 = vld [vmem:[%s4671_s0 + $0x110] sm:$0xff] }
  0x47   :  { %290 = vadd.xlane.f32.xlu1 %v289_v6  ;;  %v36_v6 = vld [vmem:[%s4671_s0 + $0x78] sm:$0xff] }
  0x48   :  { %239 = vadd.xlane.f32.xlu0 %v238_v7  ;;  %v994_v7 = vld [vmem:[%s4672_s1 + $0x58] sm:$0xff] }
  0x49   :  { %2601 = vmatpush3.msra.mxu0 %v994_v7 }
  0x4a   :  { %2602 = vmatprep.subr.mxu0 %v1009_v8 }
  0x4b   :  { %578 = vadd.xlane.f32.xlu1 %v577_v10  ;;  %v547_v10 = vsel %vm213_vm0, %v132_v5, 0.0  ;;  %2603 = vmatpush3.msra.mxu0 %v993_v9 }
  0x4c   :  { %527 = vadd.xlane.f32.xlu0 %v526_v11  ;;  %v259_v11 = vsel %vm213_vm0, %v36_v6, 0.0  ;;  %v984_v6 = vld [vmem:[%s4672_s1 + $0x8] sm:$0xff] }
  0x4f   :  { %293 = vadd.xlane.f32.xlu1 %v292_v14  ;;  %v1008_v14 = vld [vmem:[%s4672_s1 + $0xc8] sm:$0xff] }
  0x50   :  { %242 = vadd.xlane.f32.xlu0 %v241_v15  ;;  %v992_v15 = vld [vmem:[%s4672_s1 + $0x48] sm:$0xff]  ;;  %2604 = vmatprep.subr.mxu0 %v1008_v14 }
  0x51   :  { %2605 = vmatpush3.msra.mxu0 %v992_v15  ;;  %v102_v15 = vld [vmem:[%s4671_s0 + $0x288] sm:$0xff] }
  0x52   :  { %2606 = vmatprep.subr.mxu0 %v1007_v16  ;;  %v101_v16 = vld [vmem:[%s4671_s0 + $0x280] sm:$0xff] }
  0x53   :  { %581 = vadd.xlane.f32.xlu1 %v580_v18  ;;  %v358_v18 = vsel %vm213_vm0, %v69_v13, 0.0  ;;  %2607 = vmatpush3.msra.mxu0 %v991_v21 }
  0x54   :  { %530 = vadd.xlane.f32.xlu0 %v529_v19  ;;  %v166_v19 = vld [vmem:[%s4671_s0 + $0x488] sm:$0xff] }
  0x55   :  { %v649_v24 = vsel %vm213_vm0, %v166_v19, 0.0 }
  0x57   :  { %296 = vadd.xlane.f32.xlu1 %v295_v22  ;;  %v1006_v22 = vld [vmem:[%s4672_s1 + $0xb8] sm:$0xff] }
  0x58   :  { %245 = vadd.xlane.f32.xlu0 %v244_v23  ;;  %v990_v23 = vld [vmem:[%s4672_s1 + $0x38] sm:$0xff]  ;;  %2608 = vmatprep.subr.mxu0 %v1006_v22 }
  0x59   :  { %2609 = vmatpush3.msra.mxu0 %v990_v23 }
  0x5a   :  { %2610 = vmatprep.subr.mxu0 %v1005_v29  ;;  %v151_v29 = vld [vmem:[%s4671_s0 + $0x410] sm:$0xff] }
  0x5b   :  { %584 = vadd.xlane.f32.xlu1 %v583_v26  ;;  %v54_v26 = vld [vmem:[%s4671_s0 + $0x108] sm:$0xff] }
  0x5c   :  { %533 = vadd.xlane.f32.xlu0 %v532_v27  ;;  %v53_v27 = vld [vmem:[%s4671_s0 + $0x100] sm:$0xff]  ;;  %v313_v32 = vsel %vm213_vm0, %v54_v26, 0.0 }
  0x5d   :  { %v310_v33 = vsel %vm213_vm0, %v53_v27, 0.0 }
  0x5f   :  { %299 = vadd.xlane.f32.xlu1 %v298_v30  ;;  %v989_v30 = vld [vmem:[%s4672_s1 + $0x30] sm:$0xff] }
  0x60   :  { %248 = vadd.xlane.f32.xlu0 %v247_v31  ;;  %v1004_v31 = vld [vmem:[%s4672_s1 + $0xa8] sm:$0xff]  ;;  %2611 = vmatpush3.msra.mxu0 %v989_v30 }
  0x61   :  { %2612 = vmatprep.subr.mxu0 %v1004_v31 }
  0x62   :  { %2613 = vmatpush3.msra.mxu0 %v988_v37  ;;  %v604_v37 = vsel %vm213_vm0, %v151_v29, 0.0 }
  0x63   :  { %587 = vadd.xlane.f32.xlu1 %v586_v34  ;;  %v3150_v34 = vand.u32 127, %v1278_v28 }
  0x64   :  { %536 = vadd.xlane.f32.xlu0 %v535_v35  ;;  %v149_v35 = vld [vmem:[%s4671_s0 + $0x400] sm:$0xff] }
  0x65   :  { %v1284_v40 = vadd.s32 4294967288, %v3150_v34  ;;  %v598_v44 = vsel %vm213_vm0, %v149_v35, 0.0  ;;  %v1291_v5 = vadd.s32 4294967280, %v3150_v34  ;;  %v1298_v30 = vadd.s32 4294967272, %v3150_v34 }
  0x67   :  { %302 = vadd.xlane.f32.xlu1 %v301_v38  ;;  %v3161_v38 = vshrl.u32 %v1278_v28, 7  ;;  %v168_v28 = vld [vmem:[%s4671_s0 + $0x498] sm:$0xff] }
  0x68   :  { %251 = vadd.xlane.f32.xlu0 %v250_v39  ;;  %v1003_v39 = vld [vmem:[%s4672_s1 + $0xa0] sm:$0xff]  ;;  %v655_v36 = vsel %vm213_vm0, %v168_v28, 0.0 }
  0x69   :  { %2614 = vmatprep.subr.mxu0 %v1003_v39  ;;  %v3183_v49 = vsub.s32 %v3150_v34, %v3161_v38  ;;  %v3235_v21 = vsub.s32 %v1291_v5, %v3161_v38 }
  0x6a   :  { %2615 = vmatpush3.msra.mxu0 %v987_v41 }
  0x6b   :  { %590 = vadd.xlane.f32.xlu1 %v589_v42  ;;  %2616 = vmatprep.subr.mxu0 %v1002_v48  ;;  %4686 = vst [vmem:[#allocation5_spill] sm:$0xff] %v3235_v21 }
  0x6c   :  { %539 = vadd.xlane.f32.xlu0 %v538_v43  ;;  %2617 = vmatpush3.msra.mxu0 %v986_v51 }
  0x6d   :  { %2618 = vmatprep.subr.mxu0 %v1001_v54 }
  0x6e   :  { %2619 = vmatpush3.msra.mxu0 %v985_v63 }
  0x6f   :  { %305 = vadd.xlane.f32.xlu1 %v304_v46  ;;  %v167_v46 = vld [vmem:[%s4671_s0 + $0x490] sm:$0xff]  ;;  %2620 = vmatprep.subr.mxu0 %v1000_v1 }
  0x70   :  { %254 = vadd.xlane.f32.xlu0 %v253_v47  ;;  %v150_v47 = vld [vmem:[%s4671_s0 + $0x408] sm:$0xff]  ;;  %v652_v57 = vsel %vm213_vm0, %v167_v46, 0.0  ;;  %2621 = vmatpush3.msra.mxu0 %v984_v6 }
  0x71   :  { %v601_v58 = vsel %vm213_vm0, %v150_v47, 0.0 }
  0x73   :  { %593 = vadd.xlane.f32.xlu1 %v592_v52 }
  0x74   :  { %542 = vadd.xlane.f32.xlu0 %v541_v53  ;;  %v3189_v53 = vsub.s32 %v1284_v40, %v3161_v38 }
  0x77   :  { %308 = vadd.xlane.f32.xlu1 %v307_v60 }
  0x78   :  { %257 = vadd.xlane.f32.xlu0 %v256_v61  ;;  %v72_v61 = vld [vmem:[%s4671_s0 + $0x198] sm:$0xff] }
  0x79   :  { %v367_v9 = vsel %vm213_vm0, %v72_v61, 0.0 }
  0x7b   :  { %596 = vadd.xlane.f32.xlu1 %v595_v3 }
  0x7c   :  { %545 = vadd.xlane.f32.xlu0 %v544_v4 }
  0x7f   :  { %548 = vadd.xlane.f32.xlu1 %v547_v10  ;;  %v316_v10 = vsel %vm213_vm0, %v55_v62, 0.0  ;;  %v1305_v62 = vadd.s32 4294967264, %v3150_v34 }
  0x80   :  { %260 = vadd.xlane.f32.xlu0 %v259_v11 }
  0x83   :  { %362 = vadd.xlane.f32.xlu1 %v361_v17  ;;  %v999_v17 = vld [vmem:[%s4672_s1 + $0x80] sm:$0xff] }
  0x84   :  { %359 = vadd.xlane.f32.xlu0 %v358_v18  ;;  %v983_v18 = vld [vmem:[%s4672_s1] sm:$0xff]  ;;  %2622 = vmatprep.subr.mxu0 %v999_v17 }
  0x85   :  { %2623 = vmatpush3.msra.mxu0 %v983_v18 }
  0x87   :  { %650 = vadd.xlane.f32.xlu1 %v649_v24  ;;  %v457_v24 = vsel %vm213_vm0, %v102_v15, 0.0 }
  0x88   :  { %647 = vadd.xlane.f32.xlu0 %v646_v25  ;;  %v454_v25 = vsel %vm213_vm0, %v101_v16, 0.0 }
  0x8b   :  { %314 = vadd.xlane.f32.xlu1 %v313_v32 }
  0x8c   :  { %311 = vadd.xlane.f32.xlu0 %v310_v33  ;;  %v552_v42 = vpop.xlane.xlu1 %551 }
  0x8d   :  { %v264_v43 = vpop.xlane.xlu0 %263  ;;  %v903_v50 = vmul.f32 0.015625, %v552_v42  ;;  %v198_v42 = vld [vmem:[%s4671_s0 + $0x588] sm:$0xff] }
  0x8e   :  { %v807_v52 = vmul.f32 0.015625, %v264_v43  ;;  %v197_v43 = vld [vmem:[%s4671_s0 + $0x580] sm:$0xff]  ;;  %v745_v51 = vsel %vm213_vm0, %v198_v42, 0.0 }
  0x8f   :  { %599 = vadd.xlane.f32.xlu1 %v598_v44  ;;  %v1866_v0 = vrot.slane %v903_v50, %v3183_v49  ;;  %v3258_v44 = vsub.s32 %v1298_v30, %v3161_v38 }
  0x90   :  { %365 = vadd.xlane.f32.xlu0 %v364_v45  ;;  %v555_v55 = vpop.xlane.xlu1 %554  ;;  %v1392_v2 = vrot.slane %v807_v52, %v3183_v49  ;;  %v742_v52 = vsel %vm213_vm0, %v197_v43, 0.0 }
  0x91   :  { %v267_v56 = vpop.xlane.xlu0 %266  ;;  %v904_v59 = vmul.f32 0.015625, %v555_v55  ;;  %4687 = vst [vmem:[#allocation6_spill] sm:$0xff] %v3258_v44 }
  0x92   :  { %v808_v60 = vmul.f32 0.015625, %v267_v56 }
  0x93   :  { %v1870_v3 = vrot.slane %v904_v59, %v3189_v53  ;;  %653 = vadd.xlane.f32.xlu1 %v652_v57  ;;  %v56_v59 = vld [vmem:[%s4671_s0 + $0x118] sm:$0xff] }
  0x94   :  { %v1396_v4 = vrot.slane %v808_v60, %v3189_v53  ;;  %602 = vadd.xlane.f32.xlu0 %v601_v58  ;;  %v219_v7 = vpop.xlane.xlu1 %218  ;;  %v73_v58 = vld [vmem:[%s4671_s0 + $0x1a0] sm:$0xff] }
  0x95   :  { %v216_v8 = vpop.xlane.xlu0 %215  ;;  %v1871_v11 = vsel %vm1289_vm1, %v1870_v3, %v1866_v0  ;;  %v792_v13 = vmul.f32 0.015625, %v219_v7  ;;  %v370_v1 = vsel %vm213_vm0, %v73_v58, 0.0  ;;  %v86_v7 = vld [vmem:[%s4671_s0 + $0x208] sm:$0xff] }
  0x96   :  { %v1397_v12 = vsel %vm1289_vm1, %v1396_v4, %v1392_v2  ;;  %v791_v14 = vmul.f32 0.015625, %v216_v8  ;;  %v319_v2 = vsel %vm213_vm0, %v56_v59, 0.0  ;;  %v85_v8 = vld [vmem:[%s4671_s0 + $0x200] sm:$0xff] }
  0x97   :  { %v1288_v19 = vrot.slane %v792_v13, %v3189_v53  ;;  %368 = vadd.xlane.f32.xlu1 %v367_v9  ;;  %v406_v15 = vsel %vm213_vm0, %v85_v8, 0.0 }
  0x98   :  { %v1283_v20 = vrot.slane %v791_v14, %v3183_v49  ;;  %317 = vadd.xlane.f32.xlu0 %v316_v10  ;;  %v504_v22 = vpop.xlane.xlu1 %503  ;;  %v409_v14 = vsel %vm213_vm0, %v86_v7, 0.0 }
  0x99   :  { %v270_v23 = vpop.xlane.xlu0 %269  ;;  %v887_v31 = vmul.f32 0.015625, %v504_v22  ;;  %v103_v22 = vld [vmem:[%s4671_s0 + $0x290] sm:$0xff] }
  0x9a   :  { %v1290_v26 = vsel %vm1289_vm1, %v1288_v19, %v1283_v20  ;;  %v809_v27 = vmul.f32 0.015625, %v270_v23  ;;  %v152_v20 = vld [vmem:[%s4671_s0 + $0x418] sm:$0xff]  ;;  %v460_v29 = vsel %vm213_vm0, %v103_v22, 0.0 }
  0x9b   :  { %458 = vadd.xlane.f32.xlu1 %v457_v24  ;;  %v1787_v45 = vrot.slane %v887_v31, %v3183_v49  ;;  %v607_v28 = vsel %vm213_vm0, %v152_v20, 0.0 }
  0x9c   :  { %v1401_v32 = vrot.slane %v809_v27, %v3235_v21  ;;  %455 = vadd.xlane.f32.xlu0 %v454_v25  ;;  %v558_v33 = vpop.xlane.xlu1 %557  ;;  %v1312_v25 = vadd.s32 4294967256, %v3150_v34 }
  0x9d   :  { %v507_v35 = vpop.xlane.xlu0 %506  ;;  %v905_v40 = vmul.f32 0.015625, %v558_v33 }
  0x9e   :  { %v1402_v39 = vsel %vm1296_vm2, %v1401_v32, %v1397_v12  ;;  %v888_v41 = vmul.f32 0.015625, %v507_v35  ;;  %v181_v35 = vld [vmem:[%s4671_s0 + $0x500] sm:$0xff] }
  0x9f   :  { %v1875_v46 = vrot.slane %v905_v40, %v3235_v21  ;;  %656 = vadd.xlane.f32.xlu1 %v655_v36  ;;  %v169_v36 = vld [vmem:[%s4671_s0 + $0x4a0] sm:$0xff]  ;;  %v3317_v40 = vsub.s32 %v1312_v25, %v3161_v38  ;;  %v694_v43 = vsel %vm213_vm0, %v181_v35, 0.0 }
  0xa0   :  { %v1791_v47 = vrot.slane %v888_v41, %v3189_v53  ;;  %605 = vadd.xlane.f32.xlu0 %v604_v37  ;;  %v273_v48 = vpop.xlane.xlu1 %272 }
  0xa1   :  { %v222_v50 = vpop.xlane.xlu0 %221  ;;  %v1876_v54 = vsel %vm1296_vm2, %v1875_v46, %v1871_v11  ;;  %v810_v56 = vmul.f32 0.015625, %v273_v48  ;;  %v3289_v11 = vsub.s32 %v1305_v62, %v3161_v38  ;;  %4689 = vst [vmem:[#allocation8_spill] sm:$0xff] %v3317_v40 }
  0xa2   :  { %v1792_v55 = vsel %vm1289_vm1, %v1791_v47, %v1787_v45  ;;  %v793_v57 = vmul.f32 0.015625, %v222_v50  ;;  %v658_v45 = vsel %vm213_vm0, %v169_v36, 0.0  ;;  %v200_v36 = vld [vmem:[%s4671_s0 + $0x598] sm:$0xff] }
  0xa3   :  { %v1406_v60 = vrot.slane %v810_v56, %v3258_v44  ;;  %746 = vadd.xlane.f32.xlu1 %v745_v51  ;;  %4688 = vst [vmem:[#allocation7_spill] sm:$0xff] %v3289_v11  ;;  %v199_v51 = vld [vmem:[%s4671_s0 + $0x590] sm:$0xff]  ;;  %v1319_v56 = vadd.s32 4294967248, %v3150_v34 }
  0xa4   :  { %v1295_v61 = vrot.slane %v793_v57, %v3235_v21  ;;  %743 = vadd.xlane.f32.xlu0 %v742_v52  ;;  %v561_v63 = vpop.xlane.xlu1 %560  ;;  %v182_v52 = vld [vmem:[%s4671_s0 + $0x508] sm:$0xff]  ;;  %v748_v59 = vsel %vm213_vm0, %v199_v51, 0.0 }
  0xa5   :  { %v510_v0 = vpop.xlane.xlu0 %509  ;;  %v1407_v3 = vsel %vm1303_vm3, %v1406_v60, %v1402_v39  ;;  %v906_v5 = vmul.f32 0.015625, %v561_v63  ;;  %v697_v60 = vsel %vm213_vm0, %v182_v52, 0.0  ;;  %v105_v52 = vld [vmem:[%s4671_s0 + $0x2a0] sm:$0xff] }
  0xa6   :  { %v1297_v4 = vsel %vm1296_vm2, %v1295_v61, %v1290_v26  ;;  %v889_v6 = vmul.f32 0.015625, %v510_v0 }
  0xa7   :  { %v1880_v9 = vrot.slane %v906_v5, %v3258_v44  ;;  %371 = vadd.xlane.f32.xlu1 %v370_v1  ;;  %v74_v1 = vld [vmem:[%s4671_s0 + $0x1a8] sm:$0xff]  ;;  %v3345_v5 = vsub.s32 %v1319_v56, %v3161_v38 }
  0xa8   :  { %v1796_v10 = vrot.slane %v889_v6, %v3235_v21  ;;  %320 = vadd.xlane.f32.xlu0 %v319_v2  ;;  %v276_v12 = vpop.xlane.xlu1 %275  ;;  %v57_v2 = vld [vmem:[%s4671_s0 + $0x120] sm:$0xff]  ;;  %v373_v8 = vsel %vm213_vm0, %v74_v1, 0.0 }
  0xa9   :  { %v225_v13 = vpop.xlane.xlu0 %224  ;;  %v1881_v16 = vsel %vm1303_vm3, %v1880_v9, %v1876_v54  ;;  %v811_v18 = vmul.f32 0.015625, %v276_v12  ;;  %v322_v9 = vsel %vm213_vm0, %v57_v2, 0.0  ;;  %v201_v1 = vld [vmem:[%s4671_s0 + $0x5a0] sm:$0xff]  ;;  %v184_v2 = vld [vmem:[%s4671_s0 + $0x518] sm:$0xff] }
  0xaa   :  { %v1797_v17 = vsel %vm1296_vm2, %v1796_v10, %v1792_v55  ;;  %v794_v19 = vmul.f32 0.015625, %v225_v13 }
  0xab   :  { %v1411_v23 = vrot.slane %v811_v18, %v3289_v11  ;;  %410 = vadd.xlane.f32.xlu1 %v409_v14 }
  0xac   :  { %v1302_v24 = vrot.slane %v794_v19, %v3258_v44  ;;  %407 = vadd.xlane.f32.xlu0 %v406_v15  ;;  %v564_v26 = vpop.xlane.xlu1 %563  ;;  %v104_v15 = vld [vmem:[%s4671_s0 + $0x298] sm:$0xff] }
  0xad   :  { %v513_v27 = vpop.xlane.xlu0 %512  ;;  %v1412_v30 = vsel %vm1310_vm4, %v1411_v23, %v1407_v3  ;;  %v907_v32 = vmul.f32 0.015625, %v564_v26  ;;  %v463_v22 = vsel %vm213_vm0, %v104_v15, 0.0 }
  0xae   :  { %v1304_v31 = vsel %vm1303_vm3, %v1302_v24, %v1297_v4  ;;  %v890_v33 = vmul.f32 0.015625, %v513_v27  ;;  %v170_v27 = vld [vmem:[%s4671_s0 + $0x4a8] sm:$0xff] }
  0xaf   :  { %v1885_v37 = vrot.slane %v907_v32, %v3289_v11  ;;  %608 = vadd.xlane.f32.xlu1 %v607_v28  ;;  %v153_v28 = vld [vmem:[%s4671_s0 + $0x420] sm:$0xff]  ;;  %v661_v32 = vsel %vm213_vm0, %v170_v27, 0.0  ;;  %v155_v27 = vld [vmem:[%s4671_s0 + $0x430] sm:$0xff] }
  0xb0   :  { %v1801_v39 = vrot.slane %v890_v33, %v3258_v44  ;;  %461 = vadd.xlane.f32.xlu0 %v460_v29  ;;  %v279_v41 = vpop.xlane.xlu1 %278  ;;  %v610_v33 = vsel %vm213_vm0, %v153_v28, 0.0 }
  0xb1   :  { %v228_v42 = vpop.xlane.xlu0 %227  ;;  %v1886_v46 = vsel %vm1310_vm4, %v1885_v37, %v1881_v16  ;;  %v812_v48 = vmul.f32 0.015625, %v279_v41  ;;  %v87_v16 = vld [vmem:[%s4671_s0 + $0x210] sm:$0xff] }
  0xb2   :  { %v1802_v47 = vsel %vm1303_vm3, %v1801_v39, %v1797_v17  ;;  %v795_v50 = vmul.f32 0.015625, %v228_v42  ;;  %v412_v23 = vsel %vm213_vm0, %v87_v16, 0.0  ;;  %v183_v37 = vld [vmem:[%s4671_s0 + $0x510] sm:$0xff]  ;;  %v751_v42 = vsel %vm213_vm0, %v200_v36, 0.0  ;;  %v106_v16 = vld [vmem:[%s4671_s0 + $0x2a8] sm:$0xff] }
  0xb3   :  { %v1416_v54 = vrot.slane %v812_v48, %v3317_v40  ;;  %695 = vadd.xlane.f32.xlu1 %v694_v43  ;;  %v700_v43 = vsel %vm213_vm0, %v183_v37, 0.0  ;;  %v202_v36 = vld [vmem:[%s4671_s0 + $0x5a8] sm:$0xff]  ;;  %v185_v37 = vld [vmem:[%s4671_s0 + $0x520] sm:$0xff] }
  0xb4   :  { %v1309_v55 = vrot.slane %v795_v50, %v3289_v11  ;;  %659 = vadd.xlane.f32.xlu0 %v658_v45  ;;  %v567_v57 = vpop.xlane.xlu1 %566  ;;  %v75_v45 = vld [vmem:[%s4671_s0 + $0x1b0] sm:$0xff] }
  0xb5   :  { %v516_v58 = vpop.xlane.xlu0 %515  ;;  %v1417_v61 = vsel %vm1317_vm5, %v1416_v54, %v1412_v30  ;;  %v908_v63 = vmul.f32 0.015625, %v567_v57  ;;  %v376_v50 = vsel %vm213_vm0, %v75_v45, 0.0  ;;  %v88_v54 = vld [vmem:[%s4671_s0 + $0x218] sm:$0xff]  ;;  %v466_v57 = vsel %vm213_vm0, %v105_v52, 0.0 }
  0xb6   :  { %v1311_v62 = vsel %vm1310_vm4, %v1309_v55, %v1304_v31  ;;  %v891_v0 = vmul.f32 0.015625, %v516_v58  ;;  %v415_v58 = vsel %vm213_vm0, %v88_v54, 0.0  ;;  %v1340_v52 = vadd.s32 4294967224, %v3150_v34 }
  0xb7   :  { %v1890_v3 = vrot.slane %v908_v63, %v3317_v40  ;;  %749 = vadd.xlane.f32.xlu1 %v748_v59  ;;  %v171_v59 = vld [vmem:[%s4671_s0 + $0x4b0] sm:$0xff]  ;;  %v1347_v54 = vadd.s32 4294967216, %v3150_v34 }
  0xb8   :  { %v1806_v4 = vrot.slane %v891_v0, %v3289_v11  ;;  %698 = vadd.xlane.f32.xlu0 %v697_v60  ;;  %v282_v6 = vpop.xlane.xlu1 %281  ;;  %v154_v60 = vld [vmem:[%s4671_s0 + $0x428] sm:$0xff]  ;;  %v664_v63 = vsel %vm213_vm0, %v171_v59, 0.0  ;;  %v77_v59 = vld [vmem:[%s4671_s0 + $0x1c0] sm:$0xff] }
  0xb9   :  { %v231_v7 = vpop.xlane.xlu0 %230  ;;  %v3350_v10 = vsel %vm1317_vm5, %v1890_v3, %v1886_v46  ;;  %v813_v13 = vmul.f32 0.015625, %v282_v6  ;;  %v58_v46 = vld [vmem:[%s4671_s0 + $0x128] sm:$0xff]  ;;  %v613_v0 = vsel %vm213_vm0, %v154_v60, 0.0  ;;  %v754_v6 = vsel %vm213_vm0, %v201_v1, 0.0  ;;  %v60_v60 = vld [vmem:[%s4671_s0 + $0x138] sm:$0xff] }
  0xba   :  { %v1807_v12 = vsel %vm1310_vm4, %v1806_v4, %v1802_v47  ;;  %v796_v14 = vmul.f32 0.015625, %v231_v7  ;;  %v325_v51 = vsel %vm213_vm0, %v58_v46, 0.0  ;;  %v703_v7 = vsel %vm213_vm0, %v184_v2, 0.0  ;;  %v90_v1 = vld [vmem:[%s4671_s0 + $0x228] sm:$0xff] }
  0xbb   :  { %v1421_v17 = vrot.slane %v813_v13, %v3345_v5  ;;  %374 = vadd.xlane.f32.xlu1 %v373_v8  ;;  %v76_v8 = vld [vmem:[%s4671_s0 + $0x1b8] sm:$0xff]  ;;  %v1368_v2 = vadd.s32 4294967192, %v3150_v34 }
  0xbc   :  { %v1316_v18 = vrot.slane %v796_v14, %v3317_v40  ;;  %323 = vadd.xlane.f32.xlu0 %v322_v9  ;;  %v3361_v19 = vpop.xlane.xlu1 %569  ;;  %v59_v9 = vld [vmem:[%s4671_s0 + $0x130] sm:$0xff]  ;;  %v379_v14 = vsel %vm213_vm0, %v76_v8, 0.0 }
  0xbd   :  { %v519_v20 = vpop.xlane.xlu0 %518  ;;  %v3366_v24 = vsel %vm1324_vm6, %v1421_v17, %v1417_v61  ;;  %v328_v15 = vsel %vm213_vm0, %v59_v9, 0.0  ;;  %v89_v17 = vld [vmem:[%s4671_s0 + $0x220] sm:$0xff]  ;;  %v382_v9 = vsel %vm213_vm0, %v77_v59, 0.0  ;;  %v91_v59 = vld [vmem:[%s4671_s0 + $0x230] sm:$0xff] }
  0xbe   :  { %v3369_v25 = vsel %vm1317_vm5, %v1316_v18, %v1311_v62  ;;  %v892_v26 = vmul.f32 0.015625, %v519_v20 }
  0xbf   :  { %464 = vadd.xlane.f32.xlu1 %v463_v22  ;;  %v469_v22 = vsel %vm213_vm0, %v106_v16, 0.0  ;;  %v156_v16 = vld [vmem:[%s4671_s0 + $0x438] sm:$0xff] }
  0xc0   :  { %v1811_v29 = vrot.slane %v892_v26, %v3317_v40  ;;  %413 = vadd.xlane.f32.xlu0 %v412_v23  ;;  %v3378_v30 = vpop.xlane.xlu1 %284  ;;  %v418_v23 = vsel %vm213_vm0, %v89_v17, 0.0  ;;  %v172_v26 = vld [vmem:[%s4671_s0 + $0x4b8] sm:$0xff]  ;;  %v1375_v17 = vadd.s32 4294967184, %v3150_v34 }
  0xc1   :  { %v3380_v31 = vpop.xlane.xlu0 %233 }
  0xc2   :  { %v3385_v35 = vsel %vm1317_vm5, %v1811_v29, %v1807_v12 }
  0xc3   :  { %662 = vadd.xlane.f32.xlu1 %v661_v32  ;;  %v667_v32 = vsel %vm213_vm0, %v172_v26, 0.0 }
  0xc4   :  { %611 = vadd.xlane.f32.xlu0 %v610_v33  ;;  %v3393_v39 = vpop.xlane.xlu1 %572  ;;  %v616_v33 = vsel %vm213_vm0, %v155_v27, 0.0 }
  0xc5   :  { %v3395_v41 = vpop.xlane.xlu0 %521 }
  0xc7   :  { %752 = vadd.xlane.f32.xlu1 %v751_v42  ;;  %v1326_v42 = vadd.s32 4294967240, %v3150_v34 }
  0xc8   :  { %701 = vadd.xlane.f32.xlu0 %v700_v43  ;;  %v3405_v47 = vpop.xlane.xlu1 %287  ;;  %v1333_v43 = vadd.s32 4294967232, %v3150_v34 }
  0xc9   :  { %v3407_v48 = vpop.xlane.xlu0 %236  ;;  %v815_v11 = vmul.f32 0.015625, %v3405_v47 }
  0xca   :  { %v798_v44 = vmul.f32 0.015625, %v3407_v48 }
  0xcb   :  { %377 = vadd.xlane.f32.xlu1 %v376_v50  ;;  %v757_v50 = vsel %vm213_vm0, %v202_v36, 0.0  ;;  %v909_v36 = vmul.f32 0.015625, %v3361_v19  ;;  %v3563_v19 = vsub.s32 %v1368_v2, %v3161_v38  ;;  %v3581_v2 = vsub.s32 %v1375_v17, %v3161_v38  ;;  %v204_v17 = vld [vmem:[%s4671_s0 + $0x5b8] sm:$0xff] }
  0xcc   :  { %326 = vadd.xlane.f32.xlu0 %v325_v51  ;;  %v3417_v55 = vpop.xlane.xlu1 %575  ;;  %v706_v51 = vsel %vm213_vm0, %v185_v37, 0.0  ;;  %v3632_v48 = vsel %vm213_vm0, %v204_v17, 0.0 }
  0xcd   :  { %v3419_v56 = vpop.xlane.xlu0 %524 }
  0xcf   :  { %467 = vadd.xlane.f32.xlu1 %v466_v57  ;;  %v1354_v57 = vadd.s32 4294967208, %v3150_v34 }
  0xd0   :  { %416 = vadd.xlane.f32.xlu0 %v415_v58  ;;  %v3429_v61 = vpop.xlane.xlu1 %290  ;;  %v1361_v58 = vadd.s32 4294967200, %v3150_v34 }
  0xd1   :  { %v3431_v62 = vpop.xlane.xlu0 %239  ;;  %v3540_v26 = vsub.s32 %v1354_v57, %v3161_v38  ;;  %v619_v57 = vsel %vm213_vm0, %v156_v16, 0.0  ;;  %v816_v21 = vmul.f32 0.015625, %v3429_v61 }
  0xd2   :  { %v3543_v27 = vsub.s32 %v1361_v58, %v3161_v38  ;;  %v108_v58 = vld [vmem:[%s4671_s0 + $0x2b8] sm:$0xff] }
  0xd3   :  { %665 = vadd.xlane.f32.xlu1 %v664_v63  ;;  %v3508_v63 = vsub.s32 %v1326_v42, %v3161_v38  ;;  %v421_v42 = vsel %vm213_vm0, %v90_v1, 0.0 }
  0xd4   :  { %614 = vadd.xlane.f32.xlu0 %v613_v0  ;;  %v3441_v3 = vpop.xlane.xlu1 %578  ;;  %v107_v0 = vld [vmem:[%s4671_s0 + $0x2b0] sm:$0xff] }
  0xd5   :  { %v3443_v4 = vpop.xlane.xlu0 %527  ;;  %v472_v37 = vsel %vm213_vm0, %v107_v0, 0.0 }
  0xd7   :  { %755 = vadd.xlane.f32.xlu1 %v754_v6  ;;  %v3518_v6 = vsub.s32 %v1333_v43, %v3161_v38  ;;  %v78_v43 = vld [vmem:[%s4671_s0 + $0x1c8] sm:$0xff] }
  0xd8   :  { %704 = vadd.xlane.f32.xlu0 %v703_v7  ;;  %v3453_v12 = vpop.xlane.xlu1 %293 }
  0xd9   :  { %v3455_v13 = vpop.xlane.xlu0 %242 }
  0xdb   :  { %380 = vadd.xlane.f32.xlu1 %v379_v14  ;;  %v331_v14 = vsel %vm213_vm0, %v60_v60, 0.0 }
  0xdc   :  { %329 = vadd.xlane.f32.xlu0 %v328_v15  ;;  %v3465_v18 = vpop.xlane.xlu1 %581  ;;  %v173_v15 = vld [vmem:[%s4671_s0 + $0x4c0] sm:$0xff] }
  0xdd   :  { %v3467_v20 = vpop.xlane.xlu0 %530 }
  0xdf   :  { %470 = vadd.xlane.f32.xlu1 %v469_v22  ;;  %v3534_v22 = vsub.s32 %v1340_v52, %v3161_v38  ;;  %v814_v52 = vmul.f32 0.015625, %v3378_v30 }
  0xe0   :  { %419 = vadd.xlane.f32.xlu0 %v418_v23  ;;  %v3477_v28 = vpop.xlane.xlu1 %296  ;;  %v3537_v23 = vsub.s32 %v1347_v54, %v3161_v38  ;;  %v670_v54 = vsel %vm213_vm0, %v173_v15, 0.0  ;;  %v3589_v15 = vsel %vm213_vm0, %v78_v43, 0.0 }
  0xe1   :  { %v3479_v29 = vpop.xlane.xlu0 %245  ;;  %v1426_v40 = vrot.slane %v814_v52, %v3508_v63 }
  0xe3   :  { %668 = vadd.xlane.f32.xlu1 %v667_v32  ;;  %v203_v32 = vld [vmem:[%s4671_s0 + $0x5b0] sm:$0xff] }
  0xe4   :  { %617 = vadd.xlane.f32.xlu0 %v616_v33  ;;  %v3491_v45 = vpop.xlane.xlu1 %584  ;;  %v186_v33 = vld [vmem:[%s4671_s0 + $0x528] sm:$0xff]  ;;  %v760_v0 = vsel %vm213_vm0, %v203_v32, 0.0  ;;  %v157_v32 = vld [vmem:[%s4671_s0 + $0x440] sm:$0xff] }
  0xe5   :  { %v3493_v46 = vpop.xlane.xlu0 %533  ;;  %v709_v1 = vsel %vm213_vm0, %v186_v33, 0.0  ;;  %v1895_v33 = vrot.slane %v909_v36, %v3345_v5  ;;  %v3629_v47 = vsel %vm213_vm0, %v157_v32, 0.0  ;;  %v799_v32 = vmul.f32 0.015625, %v3431_v62 }
  0xe6   :  { %v895_v62 = vmul.f32 0.015625, %v3443_v4  ;;  %v913_v4 = vmul.f32 0.015625, %v3465_v18  ;;  %v801_v18 = vmul.f32 0.015625, %v3479_v29 }
  0xe7   :  { %758 = vadd.xlane.f32.xlu1 %v757_v50  ;;  %v61_v50 = vld [vmem:[%s4671_s0 + $0x140] sm:$0xff] }
  0xe8   :  { %707 = vadd.xlane.f32.xlu0 %v706_v51  ;;  %v3520_v7 = vpop.xlane.xlu1 %299  ;;  %v1382_v51 = vadd.s32 4294967176, %v3150_v34  ;;  %v797_v34 = vmul.f32 0.015625, %v3380_v31  ;;  %v893_v31 = vmul.f32 0.015625, %v3395_v41  ;;  %v3592_v16 = vsel %vm213_vm0, %v61_v50, 0.0  ;;  %v187_v50 = vld [vmem:[%s4671_s0 + $0x530] sm:$0xff] }
  0xe9   :  { %v3522_v8 = vpop.xlane.xlu0 %248  ;;  %v3605_v41 = vsel %vm213_vm0, %v91_v59, 0.0 }
  0xea   :  { %v3608_v43 = vsub.s32 %v1382_v51, %v3161_v38  ;;  %v79_v38 = vld [vmem:[%s4671_s0 + $0x1d0] sm:$0xff]  ;;  %v1323_v51 = vrot.slane %v797_v34, %v3345_v5  ;;  %v3638_v34 = vsel %vm213_vm0, %v187_v50, 0.0  ;;  %v912_v50 = vmul.f32 0.015625, %v3441_v3 }
  0xeb   :  { %383 = vadd.xlane.f32.xlu1 %v382_v9  ;;  %v174_v9 = vld [vmem:[%s4671_s0 + $0x4c8] sm:$0xff]  ;;  %v3645_v17 = vsel %vm213_vm0, %v79_v38, 0.0  ;;  %v800_v3 = vmul.f32 0.015625, %v3455_v13 }
  0xec   :  { %332 = vadd.xlane.f32.xlu0 %v331_v14  ;;  %v3574_v30 = vpop.xlane.xlu1 %587  ;;  %v910_v14 = vmul.f32 0.015625, %v3393_v39  ;;  %v3602_v39 = vsel %vm213_vm0, %v108_v58, 0.0  ;;  %v3617_v36 = vsel %vm213_vm0, %v174_v9, 0.0  ;;  %v911_v58 = vmul.f32 0.015625, %v3417_v55 }
  0xed   :  { %v3576_v60 = vpop.xlane.xlu0 %536  ;;  %v894_v9 = vmul.f32 0.015625, %v3419_v56  ;;  %v1896_v55 = vsel %vm1324_vm6, %v1895_v33, %v3350_v10  ;;  %v1330_v56 = vrot.slane %v798_v44, %v3508_v63  ;;  %v1325_v10 = vsel %vm1324_vm6, %v1323_v51, %v3369_v25 }
  0xee   :  { %v1905_v61 = vrot.slane %v911_v58, %v3518_v6  ;;  %v817_v33 = vmul.f32 0.015625, %v3453_v12  ;;  %v1436_v25 = vrot.slane %v816_v21, %v3534_v22  ;;  %v896_v12 = vmul.f32 0.015625, %v3467_v20 }
  0xef   :  { %473 = vadd.xlane.f32.xlu1 %v472_v37  ;;  %v1900_v37 = vrot.slane %v910_v14, %v3508_v63  ;;  %v1427_v14 = vsel %vm1331_vm7, %v1426_v40, %v3366_v24  ;;  %v1821_v24 = vrot.slane %v894_v9, %v3508_v63  ;;  %v1332_v51 = vsel %vm1331_vm7, %v1330_v56, %v1325_v10 }
  0xf0   :  { %422 = vadd.xlane.f32.xlu0 %v421_v42  ;;  %v3624_v59 = vpop.xlane.xlu1 %302  ;;  %v1816_v42 = vrot.slane %v893_v31, %v3345_v5  ;;  %v1431_v31 = vrot.slane %v815_v11, %v3518_v6  ;;  %v1910_v58 = vrot.slane %v912_v50, %v3534_v22  ;;  %v1826_v21 = vrot.slane %v895_v62, %v3518_v6 }
  0xf1   :  { %v3626_v52 = vpop.xlane.xlu0 %251  ;;  %v1901_v11 = vsel %vm1331_vm7, %v1900_v37, %v1896_v55  ;;  %v1441_v37 = vrot.slane %v817_v33, %v3537_v23  ;;  %v1344_v55 = vrot.slane %v800_v3, %v3534_v22  ;;  %v819_v50 = vmul.f32 0.015625, %v3520_v7 }
  0xf2   :  { %v1817_v44 = vsel %vm1324_vm6, %v1816_v42, %v3385_v35  ;;  %v818_v35 = vmul.f32 0.015625, %v3477_v28  ;;  %v1906_v13 = vsel %vm4685_vm8, %v1905_v61, %v1901_v11  ;;  %v897_v28 = vmul.f32 0.015625, %v3493_v46 }
  0xf3   :  { %671 = vadd.xlane.f32.xlu1 %v670_v54  ;;  %v1337_v54 = vrot.slane %v799_v32, %v3518_v6  ;;  %v1822_v9 = vsel %vm1331_vm7, %v1821_v24, %v1817_v44  ;;  %v914_v32 = vmul.f32 0.015625, %v3491_v45  ;;  %v1911_v29 = vsel %vm1345_vm9, %v1910_v58, %v1906_v13 }
  0xf4   :  { %620 = vadd.xlane.f32.xlu0 %v619_v57  ;;  %v591_v38 = vpop.xlane.xlu1 %590  ;;  %v1432_v57 = vsel %vm4685_vm8, %v1431_v31, %v1427_v14  ;;  %v1915_v14 = vrot.slane %v913_v4, %v3537_v23  ;;  %v1831_v31 = vrot.slane %v896_v12, %v3534_v22  ;;  %v1446_v56 = vrot.slane %v818_v35, %v3540_v26 }
  0xf5   :  { %v3657_v40 = vpop.xlane.xlu0 %539  ;;  %v802_v10 = vmul.f32 0.015625, %v3522_v8  ;;  %v1827_v45 = vsel %vm4685_vm8, %v1826_v21, %v1822_v9  ;;  %v1351_v61 = vrot.slane %v801_v18, %v3537_v23  ;;  %v915_v62 = vmul.f32 0.015625, %v3574_v30 }
  0xf6   :  { %v1920_v7 = vrot.slane %v914_v32, %v3540_v26  ;;  %v1836_v8 = vrot.slane %v897_v28, %v3537_v23  ;;  %v1832_v24 = vsel %vm1345_vm9, %v1831_v31, %v1827_v45  ;;  %v820_v3 = vmul.f32 0.015625, %v3624_v59  ;;  %v62_v31 = vld [vmem:[%s4671_s0 + $0x148] sm:$0xff] }
  0xf7   :  { %761 = vadd.xlane.f32.xlu1 %v760_v0  ;;  %v1437_v0 = vsel %vm1345_vm9, %v1436_v25, %v1432_v57  ;;  %v803_v25 = vmul.f32 0.015625, %v3626_v52  ;;  %v1358_v4 = vrot.slane %v802_v10, %v3540_v26  ;;  %v916_v12 = vmul.f32 0.015625, %v591_v38 }
  0xf8   :  { %710 = vadd.xlane.f32.xlu0 %v709_v1  ;;  %v306_v20 = vpop.xlane.xlu1 %305  ;;  %v1339_v1 = vsel %vm4685_vm8, %v1337_v54, %v1332_v51  ;;  %v1442_v46 = vsel %vm1352_vm10, %v1441_v37, %v1437_v0  ;;  %v1451_v54 = vrot.slane %v819_v50, %v3543_v27  ;;  %vm2258_vm8 = vcmask 1041409  }
  0xf9   :  { %v255_v42 = vpop.xlane.xlu0 %254  ;;  %v1346_v44 = vsel %vm1345_vm9, %v1344_v55, %v1339_v1  ;;  %v1447_v30 = vsel %vm1359_vm11, %v1446_v56, %v1442_v46  ;;  %v1925_v57 = vrot.slane %v915_v62, %v3543_v27  ;;  %v821_v59 = vmul.f32 0.015625, %v306_v20 }
  0xfa   :  { %v1837_v13 = vsel %vm1352_vm10, %v1836_v8, %v1832_v24  ;;  %v899_v37 = vmul.f32 0.015625, %v3657_v40  ;;  %v804_v18 = vmul.f32 0.015625, %v255_v42  ;;  %v1452_v9 = vsel %vm1366_vm12, %v1451_v54, %v1447_v30  ;;  %v109_v30 = vld [vmem:[%s4671_s0 + $0x2c0] sm:$0xff]  ;;  %v92_v54 = vld [vmem:[%s4671_s0 + $0x238] sm:$0xff] }
  0xfb   :  { %386 = vadd.xlane.f32.xlu1 %v3589_v15  ;;  %v898_v15 = vmul.f32 0.015625, %v3576_v60  ;;  %v1353_v60 = vsel %vm1352_vm10, %v1351_v61, %v1346_v44  ;;  %v1930_v55 = vrot.slane %v916_v12, %v3563_v19  ;;  %v1461_v0 = vrot.slane %v821_v59, %v3581_v2 }
  0xfc   :  { %335 = vadd.xlane.f32.xlu0 %v3592_v16  ;;  %v594_v33 = vpop.xlane.xlu1 %593  ;;  %v1916_v16 = vsel %vm1352_vm10, %v1915_v14, %v1911_v29  ;;  %v1360_v20 = vsel %vm1359_vm11, %v1358_v4, %v1353_v60  ;;  %v1846_v10 = vrot.slane %v899_v37, %v3543_v27  ;;  %v1372_v45 = vrot.slane %v804_v18, %v3563_v19 }
  0xfd   :  { %v543_v11 = vpop.xlane.xlu0 %542  ;;  %v917_v51 = vmul.f32 0.015625, %v594_v33  ;;  %v1921_v35 = vsel %vm1359_vm11, %v1920_v7, %v1916_v16  ;;  %v1841_v21 = vrot.slane %v898_v15, %v3540_v26 }
  0xfe   :  { %v900_v32 = vmul.f32 0.015625, %v543_v11  ;;  %v1926_v28 = vsel %vm1366_vm12, %v1925_v57, %v1921_v35  ;;  %v337_v11 = vsel %vm213_vm0, %v62_v31, 0.0  ;;  %v478_v35 = vsel %vm213_vm0, %v109_v30, 0.0  ;;  %v93_v30 = vld [vmem:[%s4671_s0 + $0x240] sm:$0xff] }
  0xff   :  { %476 = vadd.xlane.f32.xlu1 %v3602_v39  ;;  %v1456_v39 = vrot.slane %v820_v3, %v3563_v19  ;;  %v1935_v1 = vrot.slane %v917_v51, %v3581_v2  ;;  %v1842_v29 = vsel %vm1359_vm11, %v1841_v21, %v1837_v13  ;;  %v1931_v33 = vsel %vm1373_vm13, %v1930_v55, %v1926_v28 }
 0x100   :  { %425 = vadd.xlane.f32.xlu0 %v3605_v41  ;;  %v309_v52 = vpop.xlane.xlu1 %308  ;;  %v1365_v41 = vrot.slane %v803_v25, %v3543_v27  ;;  %v1851_v61 = vrot.slane %v900_v32, %v3563_v19  ;;  %v1847_v4 = vsel %vm1366_vm12, %v1846_v10, %v1842_v29  ;;  %v427_v13 = vsel %vm213_vm0, %v92_v54, 0.0  ;;  %v205_v29 = vld [vmem:[%s4671_s0 + $0x5c0] sm:$0xff] }
 0x101   :  { %v258_v58 = vpop.xlane.xlu0 %257  ;;  %v822_v38 = vmul.f32 0.015625, %v309_v52  ;;  %v1457_v46 = vsel %vm1373_vm13, %v1456_v39, %v1452_v9  ;;  %v1936_v24 = vsel %vm1380_vm14, %v1935_v1, %v1931_v33 }
 0x102   :  { %v805_v14 = vmul.f32 0.015625, %v258_v58  ;;  %v1462_v16 = vsel %vm1380_vm14, %v1461_v0, %v1457_v46  ;;  %v1852_v57 = vsel %vm1373_vm13, %v1851_v61, %v1847_v4  ;;  %v4690_v4 = vld [vmem:[#allocation5_spill] sm:$0xff] }
 0x103   :  { %674 = vadd.xlane.f32.xlu1 %v3617_v36  ;;  %v1466_v56 = vrot.slane %v822_v38, %v3608_v43 }
 0x104   :  { %623 = vadd.xlane.f32.xlu0 %v3629_v47  ;;  %v597_v40 = vpop.xlane.xlu1 %596  ;;  %v1367_v47 = vsel %vm1366_vm12, %v1365_v41, %v1360_v20  ;;  %v1379_v44 = vrot.slane %v805_v14, %v3581_v2  ;;  %v158_v20 = vld [vmem:[%s4671_s0 + $0x448] sm:$0xff] }
 0x105   :  { %v546_v42 = vpop.xlane.xlu0 %545  ;;  %v918_v36 = vmul.f32 0.015625, %v597_v40  ;;  %v1374_v12 = vsel %vm1373_vm13, %v1372_v45, %v1367_v47  ;;  %v625_v31 = vsel %vm213_vm0, %v158_v20, 0.0  ;;  %v766_v45 = vsel %vm213_vm0, %v205_v29, 0.0 }
 0x106   :  { %v901_v50 = vmul.f32 0.015625, %v546_v42  ;;  %v1381_v21 = vsel %vm1380_vm14, %v1379_v44, %v1374_v12  ;;  %v63_v44 = vld [vmem:[%s4671_s0 + $0x150] sm:$0xff] }
 0x107   :  { %v1940_v62 = vrot.slane %v918_v36, %v3608_v43  ;;  %764 = vadd.xlane.f32.xlu1 %v3632_v48  ;;  %v1467_v48 = vsel %vm1387_vm15, %v1466_v56, %v1462_v16  ;;  %v188_v56 = vld [vmem:[%s4671_s0 + $0x538] sm:$0xff] }
 0x108   :  { %713 = vadd.xlane.f32.xlu0 %v3638_v34  ;;  %v1856_v7 = vrot.slane %v901_v50, %v3581_v2  ;;  %v549_v8 = vpop.xlane.xlu1 %548  ;;  %v715_v33 = vsel %vm213_vm0, %v188_v56, 0.0 }
 0x109   :  { %v261_v15 = vpop.xlane.xlu0 %260  ;;  %v902_v3 = vmul.f32 0.015625, %v549_v8  ;;  %v1941_v34 = vsel %vm1387_vm15, %v1940_v62, %v1936_v24 }
 0x10a   :  { %v806_v25 = vmul.f32 0.015625, %v261_v15  ;;  %v2260_v60 = vsel %vm2258_vm8, %v1941_v34, %v1467_v48  ;;  %v1857_v38 = vsel %vm1380_vm14, %v1856_v7, %v1852_v57  ;;  %v340_v48 = vsel %vm213_vm0, %v63_v44, 0.0  ;;  %v110_v34 = vld [vmem:[%s4671_s0 + $0x2c8] sm:$0xff] }
 0x10b   :  { %v1861_v59 = vrot.slane %v902_v3, %v3608_v43  ;;  %389 = vadd.xlane.f32.xlu1 %v3645_v17  ;;  %2335 = vmatprep.mubr.f32.mxu0 %v2260_v60  ;;  %v175_v17 = vld [vmem:[%s4671_s0 + $0x4d0] sm:$0xff] }
 0x10c   :  { %v1386_v51 = vrot.slane %v806_v25, %v3608_v43  ;;  %338 = vadd.xlane.f32.xlu0 %v337_v11  ;;  %v363_v52 = vpop.xlane.xlu1 %362  ;;  %v676_v1 = vsel %vm213_vm0, %v175_v17, 0.0  ;;  %v80_v11 = vld [vmem:[%s4671_s0 + $0x1d8] sm:$0xff] }
 0x10d   :  { %v360_v58 = vpop.xlane.xlu0 %359  ;;  %v840_v39 = vmul.f32 0.015625, %v363_v52  ;;  %v1862_v18 = vsel %vm1387_vm15, %v1861_v59, %v1857_v38  ;;  %v391_v24 = vsel %vm213_vm0, %v80_v11, 0.0  ;;  %v481_v59 = vsel %vm213_vm0, %v110_v34, 0.0 }
 0x10e   :  { %v839_v41 = vmul.f32 0.015625, %v360_v58  ;;  %v1388_v37 = vsel %vm1387_vm15, %v1386_v51, %v1381_v21  ;;  %v159_v21 = vld [vmem:[%s4671_s0 + $0x450] sm:$0xff] }
 0x10f   :  { %v2259_v9 = vsel %vm2258_vm8, %v1862_v18, %v1388_v37  ;;  %v1554_v55 = vrot.slane %v840_v39, %v3189_v53  ;;  %479 = vadd.xlane.f32.xlu1 %v478_v35  ;;  %v430_v35 = vsel %vm213_vm0, %v93_v30, 0.0 }
 0x110   :  { %v1550_v32 = vrot.slane %v839_v41, %v3183_v49  ;;  %2336 = vmatmul.mubr.f32.vlgmr.msra.gmra.mxu0 %v2259_v9  ;;  %428 = vadd.xlane.f32.xlu0 %v427_v13  ;;  %v651_v28 = vpop.xlane.xlu1 %650  ;;  %v176_v13 = vld [vmem:[%s4671_s0 + $0x4d8] sm:$0xff]  ;;  %v628_v9 = vsel %vm213_vm0, %v159_v21, 0.0 }
 0x111   :  { %v648_v0 = vpop.xlane.xlu0 %647  ;;  %v936_v40 = vmul.f32 0.015625, %v651_v28  ;;  %v679_v17 = vsel %vm213_vm0, %v176_v13, 0.0 }
 0x112   :  { %v1555_v14 = vsel %vm1289_vm1, %v1554_v55, %v1550_v32  ;;  %v935_v42 = vmul.f32 0.015625, %v648_v0  ;;  %v206_v0 = vld [vmem:[%s4671_s0 + $0x5c8] sm:$0xff] }
 0x113   :  { %v2028_v36 = vrot.slane %v936_v40, %v3189_v53  ;;  %677 = vadd.xlane.f32.xlu1 %v676_v1  ;;  %v189_v1 = vld [vmem:[%s4671_s0 + $0x540] sm:$0xff]  ;;  %v769_v56 = vsel %vm213_vm0, %v206_v0, 0.0 }
 0x114   :  { %v2024_v50 = vrot.slane %v935_v42, %v3183_v49  ;;  %626 = vadd.xlane.f32.xlu0 %v625_v31  ;;  %v315_v47 = vpop.xlane.xlu1 %314 }
 0x115   :  { %v312_v10 = vpop.xlane.xlu0 %311  ;;  %v824_v61 = vmul.f32 0.015625, %v315_v47 }
 0x116   :  { %v2029_v46 = vsel %vm1289_vm1, %v2028_v36, %v2024_v50  ;;  %v823_v62 = vmul.f32 0.015625, %v312_v10  ;;  %v718_v36 = vsel %vm213_vm0, %v189_v1, 0.0 }
 0x117   :  { %v1475_v7 = vrot.slane %v824_v61, %v3189_v53  ;;  %767 = vadd.xlane.f32.xlu1 %v766_v45  ;;  %v64_v61 = vld [vmem:[%s4671_s0 + $0x158] sm:$0xff] }
 0x118   :  { %v1471_v8 = vrot.slane %v823_v62, %v3183_v49  ;;  %716 = vadd.xlane.f32.xlu0 %v715_v33  ;;  %v600_v15 = vpop.xlane.xlu1 %599 }
 0x119   :  { %v366_v16 = vpop.xlane.xlu0 %365  ;;  %v919_v54 = vmul.f32 0.015625, %v600_v15 }
 0x11a   :  { %v1476_v3 = vsel %vm1289_vm1, %v1475_v7, %v1471_v8  ;;  %v841_v25 = vmul.f32 0.015625, %v366_v16 }
 0x11b   :  { %392 = vadd.xlane.f32.xlu1 %v391_v24  ;;  %v1945_v38 = vrot.slane %v919_v54, %v3183_v49  ;;  %v343_v24 = vsel %vm213_vm0, %v64_v61, 0.0 }
 0x11c   :  { %v1559_v12 = vrot.slane %v841_v25, %v4690_v4  ;;  %341 = vadd.xlane.f32.xlu0 %v340_v48  ;;  %v654_v60 = vpop.xlane.xlu1 %653  ;;  %v94_v25 = vld [vmem:[%s4671_s0 + $0x248] sm:$0xff] }
 0x11d   :  { %v603_v57 = vpop.xlane.xlu0 %602  ;;  %v937_v52 = vmul.f32 0.015625, %v654_v60  ;;  %v433_v60 = vsel %vm213_vm0, %v94_v25, 0.0 }
 0x11e   :  { %v1560_v51 = vsel %vm1296_vm2, %v1559_v12, %v1555_v14  ;;  %v920_v58 = vmul.f32 0.015625, %v603_v57  ;;  %v4691_v14 = vld [vmem:[#allocation6_spill] sm:$0xff] }
 0x11f   :  { %v2033_v39 = vrot.slane %v937_v52, %v4690_v4  ;;  %482 = vadd.xlane.f32.xlu1 %v481_v59 }
 0x120   :  { %v1949_v41 = vrot.slane %v920_v58, %v3189_v53  ;;  %431 = vadd.xlane.f32.xlu0 %v430_v35  ;;  %v369_v37 = vpop.xlane.xlu1 %368  ;;  %v177_v58 = vld [vmem:[%s4671_s0 + $0x4e0] sm:$0xff]  ;;  %v160_v35 = vld [vmem:[%s4671_s0 + $0x458] sm:$0xff] }
 0x121   :  { %v318_v18 = vpop.xlane.xlu0 %317  ;;  %v2034_v20 = vsel %vm1296_vm2, %v2033_v39, %v2029_v46  ;;  %v842_v32 = vmul.f32 0.015625, %v369_v37  ;;  %v81_v46 = vld [vmem:[%s4671_s0 + $0x1e0] sm:$0xff] }
 0x122   :  { %v1950_v55 = vsel %vm1289_vm1, %v1949_v41, %v1945_v38  ;;  %v825_v28 = vmul.f32 0.015625, %v318_v18  ;;  %v394_v7 = vsel %vm213_vm0, %v81_v46, 0.0  ;;  %v682_v41 = vsel %vm213_vm0, %v177_v58, 0.0  ;;  %v65_v46 = vld [vmem:[%s4671_s0 + $0x160] sm:$0xff] }
 0x123   :  { %v1564_v40 = vrot.slane %v842_v32, %v4691_v14  ;;  %680 = vadd.xlane.f32.xlu1 %v679_v17  ;;  %v4692_v32 = vld [vmem:[#allocation7_spill] sm:$0xff]  ;;  %v161_v58 = vld [vmem:[%s4671_s0 + $0x460] sm:$0xff] }
 0x124   :  { %v1480_v42 = vrot.slane %v825_v28, %v4690_v4  ;;  %629 = vadd.xlane.f32.xlu0 %v628_v9  ;;  %v459_v31 = vpop.xlane.xlu1 %458  ;;  %v631_v9 = vsel %vm213_vm0, %v160_v35, 0.0 }
 0x125   :  { %v456_v29 = vpop.xlane.xlu0 %455  ;;  %v1565_v50 = vsel %vm1303_vm3, %v1564_v40, %v1560_v51  ;;  %v872_v10 = vmul.f32 0.015625, %v459_v31 }
 0x126   :  { %v1481_v47 = vsel %vm1296_vm2, %v1480_v42, %v1476_v3  ;;  %v871_v45 = vmul.f32 0.015625, %v456_v29  ;;  %v111_v3 = vld [vmem:[%s4671_s0 + $0x2d0] sm:$0xff] }
 0x127   :  { %v1712_v62 = vrot.slane %v872_v10, %v3189_v53  ;;  %770 = vadd.xlane.f32.xlu1 %v769_v56  ;;  %v484_v12 = vsel %vm213_vm0, %v111_v3, 0.0 }
 0x128   :  { %v1708_v33 = vrot.slane %v871_v45, %v3183_v49  ;;  %719 = vadd.xlane.f32.xlu0 %v718_v36  ;;  %v657_v11 = vpop.xlane.xlu1 %656  ;;  %v82_v45 = vld [vmem:[%s4671_s0 + $0x1e8] sm:$0xff] }
 0x129   :  { %v606_v44 = vpop.xlane.xlu0 %605  ;;  %v938_v15 = vmul.f32 0.015625, %v657_v11 }
 0x12a   :  { %v3842_v8 = vsel %vm1289_vm1, %v1712_v62, %v1708_v33  ;;  %v921_v16 = vmul.f32 0.015625, %v606_v44 }
 0x12b   :  { %v2038_v48 = vrot.slane %v938_v15, %v4691_v14  ;;  %395 = vadd.xlane.f32.xlu1 %v394_v7  ;;  %v346_v15 = vsel %vm213_vm0, %v65_v46, 0.0 }
 0x12c   :  { %v1954_v34 = vrot.slane %v921_v16, %v4690_v4  ;;  %344 = vadd.xlane.f32.xlu0 %v343_v24  ;;  %v747_v30 = vpop.xlane.xlu1 %746  ;;  %v112_v16 = vld [vmem:[%s4671_s0 + $0x2d8] sm:$0xff]  ;;  %v95_v24 = vld [vmem:[%s4671_s0 + $0x250] sm:$0xff] }
 0x12d   :  { %v744_v54 = vpop.xlane.xlu0 %743  ;;  %v3856_v57 = vsel %vm1303_vm3, %v2038_v48, %v2034_v20  ;;  %v968_v51 = vmul.f32 0.015625, %v747_v30  ;;  %v207_v20 = vld [vmem:[%s4671_s0 + $0x5d0] sm:$0xff]  ;;  %v487_v30 = vsel %vm213_vm0, %v112_v16, 0.0  ;;  %v113_v16 = vld [vmem:[%s4671_s0 + $0x2e0] sm:$0xff] }
 0x12e   :  { %v1955_v59 = vsel %vm1296_vm2, %v1954_v34, %v1950_v55  ;;  %v967_v52 = vmul.f32 0.015625, %v744_v54  ;;  %v190_v55 = vld [vmem:[%s4671_s0 + $0x548] sm:$0xff]  ;;  %v772_v42 = vsel %vm213_vm0, %v207_v20, 0.0 }
 0x12f   :  { %v2186_v13 = vrot.slane %v968_v51, %v3189_v53  ;;  %485 = vadd.xlane.f32.xlu1 %v484_v12  ;;  %v721_v31 = vsel %vm213_vm0, %v190_v55, 0.0  ;;  %v436_v51 = vsel %vm213_vm0, %v95_v24, 0.0  ;;  %v96_v24 = vld [vmem:[%s4671_s0 + $0x258] sm:$0xff] }
 0x130   :  { %v2182_v21 = vrot.slane %v967_v52, %v3183_v49  ;;  %434 = vadd.xlane.f32.xlu0 %v433_v60  ;;  %v372_v38 = vpop.xlane.xlu1 %371  ;;  %v178_v52 = vld [vmem:[%s4671_s0 + $0x4e8] sm:$0xff] }
 0x131   :  { %v321_v39 = vpop.xlane.xlu0 %320  ;;  %v843_v18 = vmul.f32 0.015625, %v372_v38 }
 0x132   :  { %v3869_v37 = vsel %vm1289_vm1, %v2186_v13, %v2182_v21  ;;  %v826_v17 = vmul.f32 0.015625, %v321_v39 }
 0x133   :  { %v1569_v28 = vrot.slane %v843_v18, %v4692_v32  ;;  %683 = vadd.xlane.f32.xlu1 %v682_v41  ;;  %v634_v18 = vsel %vm213_vm0, %v161_v58, 0.0  ;;  %v179_v58 = vld [vmem:[%s4671_s0 + $0x4f0] sm:$0xff] }
 0x134   :  { %v1485_v0 = vrot.slane %v826_v17, %v4691_v14  ;;  %632 = vadd.xlane.f32.xlu0 %v631_v9  ;;  %v411_v1 = vpop.xlane.xlu1 %410  ;;  %v208_v17 = vld [vmem:[%s4671_s0 + $0x5d8] sm:$0xff]  ;;  %v191_v9 = vld [vmem:[%s4671_s0 + $0x550] sm:$0xff] }
 0x135   :  { %v408_v40 = vpop.xlane.xlu0 %407  ;;  %v3883_v29 = vsel %vm1310_vm4, %v1569_v28, %v1565_v50  ;;  %v856_v36 = vmul.f32 0.015625, %v411_v1  ;;  %v775_v1 = vsel %vm213_vm0, %v208_v17, 0.0 }
 0x136   :  { %v3886_v56 = vsel %vm1303_vm3, %v1485_v0, %v1481_v47  ;;  %v855_v10 = vmul.f32 0.015625, %v408_v40  ;;  %v397_v47 = vsel %vm213_vm0, %v82_v45, 0.0  ;;  %v724_v40 = vsel %vm213_vm0, %v191_v9, 0.0  ;;  %v4693_v45 = vld [vmem:[#allocation8_spill] sm:$0xff] }
 0x137   :  { %v1633_v61 = vrot.slane %v856_v36, %v3189_v53  ;;  %773 = vadd.xlane.f32.xlu1 %v772_v42  ;;  %v209_v9 = vld [vmem:[%s4671_s0 + $0x5e0] sm:$0xff] }
 0x138   :  { %v1629_v62 = vrot.slane %v855_v10, %v3183_v49  ;;  %722 = vadd.xlane.f32.xlu0 %v721_v31  ;;  %v609_v50 = vpop.xlane.xlu1 %608 }
 0x139   :  { %v462_v33 = vpop.xlane.xlu0 %461  ;;  %v922_v44 = vmul.f32 0.015625, %v609_v50 }
 0x13a   :  { %v3898_v11 = vsel %vm1289_vm1, %v1633_v61, %v1629_v62  ;;  %v873_v7 = vmul.f32 0.015625, %v462_v33 }
 0x13b   :  { %v1959_v3 = vrot.slane %v922_v44, %v4691_v14  ;;  %398 = vadd.xlane.f32.xlu1 %v397_v47 }
 0x13c   :  { %v1717_v25 = vrot.slane %v873_v7, %v4690_v4  ;;  %347 = vadd.xlane.f32.xlu0 %v346_v15  ;;  %v696_v48 = vpop.xlane.xlu1 %695 }
 0x13d   :  { %v660_v34 = vpop.xlane.xlu0 %659  ;;  %v3911_v54 = vsel %vm1303_vm3, %v1959_v3, %v1955_v59  ;;  %v951_v35 = vmul.f32 0.015625, %v696_v48 }
 0x13e   :  { %v1718_v12 = vsel %vm1296_vm2, %v1717_v25, %v3842_v8  ;;  %v939_v60 = vmul.f32 0.015625, %v660_v34  ;;  %v685_v8 = vsel %vm213_vm0, %v178_v52, 0.0  ;;  %v439_v34 = vsel %vm213_vm0, %v96_v24, 0.0 }
 0x13f   :  { %488 = vadd.xlane.f32.xlu1 %v487_v30  ;;  %v2103_v20 = vrot.slane %v951_v35, %v3183_v49  ;;  %v83_v49 = vld [vmem:[%s4671_s0 + $0x1f0] sm:$0xff]  ;;  %v162_v35 = vld [vmem:[%s4671_s0 + $0x468] sm:$0xff] }
 0x140   :  { %v2043_v13 = vrot.slane %v939_v60, %v4692_v32  ;;  %437 = vadd.xlane.f32.xlu0 %v436_v51  ;;  %v750_v59 = vpop.xlane.xlu1 %749  ;;  %v400_v50 = vsel %vm213_vm0, %v83_v49, 0.0  ;;  %v67_v49 = vld [vmem:[%s4671_s0 + $0x170] sm:$0xff] }
 0x141   :  { %v699_v21 = vpop.xlane.xlu0 %698  ;;  %v969_v39 = vmul.f32 0.015625, %v750_v59 }
 0x142   :  { %v2044_v38 = vsel %vm1310_vm4, %v2043_v13, %v3856_v57  ;;  %v952_v41 = vmul.f32 0.015625, %v699_v21 }
 0x143   :  { %v2191_v55 = vrot.slane %v969_v39, %v4690_v4  ;;  %686 = vadd.xlane.f32.xlu1 %v685_v8  ;;  %v637_v8 = vsel %vm213_vm0, %v162_v35, 0.0 }
 0x144   :  { %v2107_v28 = vrot.slane %v952_v41, %v3189_v53  ;;  %635 = vadd.xlane.f32.xlu0 %v634_v18  ;;  %v375_v57 = vpop.xlane.xlu1 %374  ;;  %v66_v53 = vld [vmem:[%s4671_s0 + $0x168] sm:$0xff] }
 0x145   :  { %v324_v0 = vpop.xlane.xlu0 %323  ;;  %v2192_v42 = vsel %vm1296_vm2, %v2191_v55, %v3869_v37  ;;  %v844_v36 = vmul.f32 0.015625, %v375_v57  ;;  %v349_v33 = vsel %vm213_vm0, %v66_v53, 0.0 }
 0x146   :  { %v2108_v31 = vsel %vm1289_vm1, %v2107_v28, %v2103_v20  ;;  %v827_v10 = vmul.f32 0.015625, %v324_v0  ;;  %v192_v20 = vld [vmem:[%s4671_s0 + $0x558] sm:$0xff]  ;;  %vm4694_vm1 = vcmask 589312  }
 0x147   :  { %v1574_v46 = vrot.slane %v844_v36, %v4693_v45  ;;  %776 = vadd.xlane.f32.xlu1 %v775_v1  ;;  %v727_v0 = vsel %vm213_vm0, %v192_v20, 0.0  ;;  %v210_v20 = vld [vmem:[%s4671_s0 + $0x5e8] sm:$0xff] }
 0x148   :  { %v1490_v61 = vrot.slane %v827_v10, %v4692_v32  ;;  %725 = vadd.xlane.f32.xlu0 %v724_v40  ;;  %v465_v62 = vpop.xlane.xlu1 %464 }
 0x149   :  { %v414_v37 = vpop.xlane.xlu0 %413  ;;  %v1575_v47 = vsel %vm1317_vm5, %v1574_v46, %v3883_v29  ;;  %v874_v7 = vmul.f32 0.015625, %v465_v62  ;;  %v352_v62 = vsel %vm213_vm0, %v67_v49, 0.0 }
 0x14a   :  { %v1491_v44 = vsel %vm1310_vm4, %v1490_v61, %v3886_v56  ;;  %v857_v15 = vmul.f32 0.015625, %v414_v37  ;;  %v490_v56 = vsel %vm213_vm0, %v113_v16, 0.0  ;;  %v97_v16 = vld [vmem:[%s4671_s0 + $0x260] sm:$0xff] }
 0x14b   :  { %v1722_v3 = vrot.slane %v874_v7, %v4691_v14  ;;  %401 = vadd.xlane.f32.xlu1 %v400_v50 }
 0x14c   :  { %v1638_v25 = vrot.slane %v857_v15, %v4690_v4  ;;  %350 = vadd.xlane.f32.xlu0 %v349_v33  ;;  %v663_v29 = vpop.xlane.xlu1 %662  ;;  %v114_v15 = vld [vmem:[%s4671_s0 + $0x2e8] sm:$0xff] }
 0x14d   :  { %v612_v48 = vpop.xlane.xlu0 %611  ;;  %v1723_v30 = vsel %vm1303_vm3, %v1722_v3, %v1718_v12  ;;  %v940_v51 = vmul.f32 0.015625, %v663_v29  ;;  %v442_v29 = vsel %vm213_vm0, %v97_v16, 0.0 }
 0x14e   :  { %v1639_v60 = vsel %vm1296_vm2, %v1638_v25, %v3898_v11  ;;  %v923_v52 = vmul.f32 0.015625, %v612_v48  ;;  %v688_v11 = vsel %vm213_vm0, %v179_v58, 0.0  ;;  %v163_v58 = vld [vmem:[%s4671_s0 + $0x470] sm:$0xff] }
 0x14f   :  { %v2048_v13 = vrot.slane %v940_v51, %v4693_v45  ;;  %491 = vadd.xlane.f32.xlu1 %v490_v56 }
 0x150   :  { %v1964_v59 = vrot.slane %v923_v52, %v4692_v32  ;;  %440 = vadd.xlane.f32.xlu0 %v439_v34  ;;  %v753_v12 = vpop.xlane.xlu1 %752  ;;  %v180_v52 = vld [vmem:[%s4671_s0 + $0x4f8] sm:$0xff] }
 0x151   :  { %v702_v21 = vpop.xlane.xlu0 %701  ;;  %v2049_v39 = vsel %vm1317_vm5, %v2048_v13, %v2044_v38  ;;  %v970_v18 = vmul.f32 0.015625, %v753_v12  ;;  %v691_v12 = vsel %vm213_vm0, %v180_v52, 0.0 }
 0x152   :  { %v1965_v41 = vsel %vm1310_vm4, %v1964_v59, %v3911_v54  ;;  %v953_v17 = vmul.f32 0.015625, %v702_v21  ;;  %v778_v54 = vsel %vm213_vm0, %v209_v9, 0.0  ;;  %v640_v21 = vsel %vm213_vm0, %v163_v58, 0.0 }
 0x153   :  { %v2196_v55 = vrot.slane %v970_v18, %v4691_v14  ;;  %689 = vadd.xlane.f32.xlu1 %v688_v11  ;;  %v1030_v11 = vld [vmem:[%s4672_s1 + $0x178] sm:$0xff] }
 0x154   :  { %v2112_v28 = vrot.slane %v953_v17, %v4690_v4  ;;  %638 = vadd.xlane.f32.xlu0 %v637_v8  ;;  %v378_v38 = vpop.xlane.xlu1 %377  ;;  %v84_v4 = vld [vmem:[%s4671_s0 + $0x1f8] sm:$0xff] }
 0x155   :  { %v327_v57 = vpop.xlane.xlu0 %326  ;;  %v3992_v1 = vsel %vm1303_vm3, %v2196_v55, %v2192_v42  ;;  %v845_v36 = vmul.f32 0.015625, %v378_v38  ;;  %v193_v55 = vld [vmem:[%s4671_s0 + $0x560] sm:$0xff] }
 0x156   :  { %v3995_v40 = vsel %vm1296_vm2, %v2112_v28, %v2108_v31  ;;  %v828_v10 = vmul.f32 0.015625, %v327_v57  ;;  %v403_v31 = vsel %vm213_vm0, %v84_v4, 0.0  ;;  %v1045_v28 = vld [vmem:[%s4672_s1 + $0x1f0] sm:$0xff]  ;;  %v1044_v57 = vld [vmem:[%s4672_s1 + $0x1e8] sm:$0xff] }
 0x157   :  { %v1579_v53 = vrot.slane %v845_v36, %v3345_v5  ;;  %779 = vadd.xlane.f32.xlu1 %v778_v54  ;;  %v781_v36 = vsel %vm213_vm0, %v210_v20, 0.0  ;;  %v1028_v4 = vld [vmem:[%s4672_s1 + $0x168] sm:$0xff]  ;;  %v211_v20 = vld [vmem:[%s4671_s0 + $0x5f0] sm:$0xff] }
 0x158   :  { %v1495_v46 = vrot.slane %v828_v10, %v4693_v45  ;;  %728 = vadd.xlane.f32.xlu0 %v727_v0  ;;  %v468_v42 = vpop.xlane.xlu1 %467  ;;  %v730_v10 = vsel %vm213_vm0, %v193_v55, 0.0  ;;  %v194_v55 = vld [vmem:[%s4671_s0 + $0x568] sm:$0xff] }
 0x159   :  { %v417_v61 = vpop.xlane.xlu0 %416  ;;  %v4008_v37 = vsel %vm1324_vm6, %v1579_v53, %v1575_v47  ;;  %v875_v33 = vmul.f32 0.015625, %v468_v42  ;;  %v98_v42 = vld [vmem:[%s4671_s0 + $0x268] sm:$0xff] }
 0x15a   :  { %v4011_v50 = vsel %vm1317_vm5, %v1495_v46, %v1491_v44  ;;  %v858_v7 = vmul.f32 0.015625, %v417_v61  ;;  %v493_v44 = vsel %vm213_vm0, %v114_v15, 0.0  ;;  %v68_v61 = vld [vmem:[%s4671_s0 + $0x178] sm:$0xff]  ;;  %v445_v16 = vsel %vm213_vm0, %v98_v42, 0.0 }
 0x15b   :  { %v1727_v24 = vrot.slane %v875_v33, %v4692_v32  ;;  %404 = vadd.xlane.f32.xlu1 %v403_v31  ;;  %v1042_v33 = vld [vmem:[%s4672_s1 + $0x1d8] sm:$0xff] }
 0x15c   :  { %v1643_v3 = vrot.slane %v858_v7, %v4691_v14  ;;  %353 = vadd.xlane.f32.xlu0 %v352_v62  ;;  %v666_v47 = vpop.xlane.xlu1 %665 }
 0x15d   :  { %v615_v25 = vpop.xlane.xlu0 %614  ;;  %v4024_v48 = vsel %vm1310_vm4, %v1727_v24, %v1723_v30  ;;  %v941_v34 = vmul.f32 0.015625, %v666_v47  ;;  %v1046_v30 = vld [vmem:[%s4672_s1 + $0x1f8] sm:$0xff]  ;;  %v355_v24 = vsel %vm213_vm0, %v68_v61, 0.0 }
 0x15e   :  { %v4027_v56 = vsel %vm1303_vm3, %v1643_v3, %v1639_v60  ;;  %v924_v51 = vmul.f32 0.015625, %v615_v25  ;;  %2627 = vmatprep.subr.mxu1 %v1046_v30  ;;  %v1026_v3 = vld [vmem:[%s4672_s1 + $0x158] sm:$0xff] }
 0x15f   :  { %v2053_v35 = vrot.slane %v941_v34, %v3345_v5  ;;  %494 = vadd.xlane.f32.xlu1 %v493_v44  ;;  %2628 = vmatpush3.msra.mxu1 %v1030_v11  ;;  %v164_v34 = vld [vmem:[%s4671_s0 + $0x478] sm:$0xff] }
 0x160   :  { %v1969_v13 = vrot.slane %v924_v51, %v4693_v45  ;;  %443 = vadd.xlane.f32.xlu0 %v442_v29  ;;  %v756_v60 = vpop.xlane.xlu1 %755  ;;  %2629 = vmatprep.subr.mxu1 %v1045_v28  ;;  %v115_v51 = vld [vmem:[%s4671_s0 + $0x2f0] sm:$0xff] }
 0x161   :  { %v705_v59 = vpop.xlane.xlu0 %704  ;;  %v4046_v8 = vsel %vm1324_vm6, %v2053_v35, %v2049_v39  ;;  %v971_v17 = vmul.f32 0.015625, %v756_v60  ;;  %v1029_v39 = vld [vmem:[%s4672_s1 + $0x170] sm:$0xff]  ;;  %v1040_v35 = vld [vmem:[%s4672_s1 + $0x1c8] sm:$0xff]  ;;  %v643_v60 = vsel %vm213_vm0, %v164_v34, 0.0 }
 0x162   :  { %v4049_v18 = vsel %vm1317_vm5, %v1969_v13, %v1965_v41  ;;  %v954_v9 = vmul.f32 0.015625, %v705_v59  ;;  %2630 = vmatpush3.msra.mxu1 %v1029_v39  ;;  %v496_v59 = vsel %vm213_vm0, %v115_v51, 0.0  ;;  %v1060_v34 = vld [vmem:[%s4672_s1 + $0x268] sm:$0xff] }
 0x163   :  { %v2201_v41 = vrot.slane %v971_v17, %v4692_v32  ;;  %692 = vadd.xlane.f32.xlu1 %v691_v12  ;;  %2631 = vmatprep.subr.mxu1 %v1044_v57  ;;  %v1024_v12 = vld [vmem:[%s4672_s1 + $0x148] sm:$0xff] }
 0x164   :  { %v2117_v38 = vrot.slane %v954_v9, %v4691_v14  ;;  %641 = vadd.xlane.f32.xlu0 %v640_v21  ;;  %v381_v54 = vpop.xlane.xlu1 %380  ;;  %2632 = vmatpush3.msra.mxu1 %v1028_v4  ;;  %v1022_v4 = vld [vmem:[%s4672_s1 + $0x138] sm:$0xff] }
 0x165   :  { %v330_v0 = vpop.xlane.xlu0 %329  ;;  %v4075_v14 = vsel %vm1310_vm4, %v2201_v41, %v3992_v1  ;;  %v846_v53 = vmul.f32 0.015625, %v381_v54  ;;  %v1043_v1 = vld [vmem:[%s4672_s1 + $0x1e0] sm:$0xff]  ;;  %v1038_v41 = vld [vmem:[%s4672_s1 + $0x1b8] sm:$0xff] }
 0x166   :  { %v4079_v49 = vsel %vm1303_vm3, %v2117_v38, %v3995_v40  ;;  %v829_v46 = vmul.f32 0.015625, %v330_v0  ;;  %2633 = vmatprep.subr.mxu1 %v1043_v1  ;;  %v1027_v40 = vld [vmem:[%s4672_s1 + $0x160] sm:$0xff]  ;;  %v1078_v38 = vld [vmem:[%s4672_s1 + $0x2f8] sm:$0xff]  ;;  %v784_v0 = vsel %vm213_vm0, %v211_v20, 0.0 }
 0x167   :  { %v1584_v31 = vrot.slane %v846_v53, %v3508_v63  ;;  %782 = vadd.xlane.f32.xlu1 %v781_v36  ;;  %2634 = vmatpush3.msra.mxu1 %v1027_v40  ;;  %v733_v36 = vsel %vm213_vm0, %v194_v55, 0.0  ;;  %v1062_v53 = vld [vmem:[%s4672_s1 + $0x278] sm:$0xff]  ;;  %v99_v40 = vld [vmem:[%s4671_s0 + $0x270] sm:$0xff] }
 0x168   :  { %v1500_v62 = vrot.slane %v829_v46, %v3345_v5  ;;  %731 = vadd.xlane.f32.xlu0 %v730_v10  ;;  %v471_v7 = vpop.xlane.xlu1 %470  ;;  %2635 = vmatprep.subr.mxu1 %v1042_v33  ;;  %v116_v10 = vld [vmem:[%s4671_s0 + $0x2f8] sm:$0xff] }
 0x169   :  { %v420_v15 = vpop.xlane.xlu0 %419  ;;  %v4105_v47 = vsel %vm1331_vm7, %v1584_v31, %v4008_v37  ;;  %v876_v44 = vmul.f32 0.015625, %v471_v7  ;;  %2636 = vmatpush3.msra.mxu1 %v1026_v3  ;;  %v1041_v37 = vld [vmem:[%s4672_s1 + $0x1d0] sm:$0xff]  ;;  %2662 = vmatprep.subr.mxu0 %v1078_v38  ;;  %v196_v38 = vld [vmem:[%s4671_s0 + $0x578] sm:$0xff] }
 0x16a   :  { %v4109_v25 = vsel %vm1324_vm6, %v1500_v62, %v4011_v50  ;;  %v859_v29 = vmul.f32 0.015625, %v420_v15  ;;  %2637 = vmatprep.subr.mxu1 %v1041_v37  ;;  %v1025_v50 = vld [vmem:[%s4672_s1 + $0x150] sm:$0xff]  ;;  %2663 = vmatpush3.msra.mxu0 %v1062_v53  ;;  %v1036_v15 = vld [vmem:[%s4672_s1 + $0x1a8] sm:$0xff] }
 0x16b   :  { %v1732_v52 = vrot.slane %v876_v44, %v4693_v45  ;;  %446 = vadd.xlane.f32.xlu1 %v445_v16  ;;  %2638 = vmatpush3.msra.mxu1 %v1025_v50  ;;  %v1037_v31 = vld [vmem:[%s4672_s1 + $0x1b0] sm:$0xff]  ;;  %v1076_v16 = vld [vmem:[%s4672_s1 + $0x2e8] sm:$0xff]  ;;  %v499_v44 = vsel %vm213_vm0, %v116_v10, 0.0 }
 0x16c   :  { %v1648_v58 = vrot.slane %v859_v29, %v4692_v32  ;;  %356 = vadd.xlane.f32.xlu0 %v355_v24  ;;  %v669_v13 = vpop.xlane.xlu1 %668  ;;  %2639 = vmatprep.subr.mxu1 %v1040_v35  ;;  %v1061_v62 = vld [vmem:[%s4672_s1 + $0x270] sm:$0xff]  ;;  %v448_v29 = vsel %vm213_vm0, %v99_v40, 0.0 }
 0x16d   :  { %v618_v30 = vpop.xlane.xlu0 %617  ;;  %v4135_v21 = vsel %vm1317_vm5, %v1732_v52, %v4024_v48  ;;  %v942_v17 = vmul.f32 0.015625, %v669_v13  ;;  %2640 = vmatpush3.msra.mxu1 %v1024_v12  ;;  %v1039_v48 = vld [vmem:[%s4672_s1 + $0x1c0] sm:$0xff]  ;;  %v195_v35 = vld [vmem:[%s4671_s0 + $0x570] sm:$0xff]  ;;  %v1034_v12 = vld [vmem:[%s4672_s1 + $0x198] sm:$0xff] }
 0x16e   :  { %v4139_v11 = vsel %vm1310_vm4, %v1648_v58, %v4027_v56  ;;  %v925_v9 = vmul.f32 0.015625, %v618_v30  ;;  %2641 = vmatprep.subr.mxu1 %v1039_v48  ;;  %v1023_v56 = vld [vmem:[%s4672_s1 + $0x140] sm:$0xff]  ;;  %v212_v58 = vld [vmem:[%s4671_s0 + $0x5f8] sm:$0xff]  ;;  %v736_v55 = vsel %vm213_vm0, %v195_v35, 0.0  ;;  %v1073_v10 = vld [vmem:[%s4672_s1 + $0x2d0] sm:$0xff] }
 0x16f   :  { %v2058_v28 = vrot.slane %v942_v17, %v3508_v63  ;;  %644 = vadd.xlane.f32.xlu1 %v643_v60  ;;  %2642 = vmatpush3.msra.mxu1 %v1023_v56  ;;  %v1019_v13 = vld [vmem:[%s4672_s1 + $0x120] sm:$0xff]  ;;  %v787_v20 = vsel %vm213_vm0, %v212_v58, 0.0  ;;  %v1074_v48 = vld [vmem:[%s4672_s1 + $0x2d8] sm:$0xff] }
 0x170   :  { %v1974_v39 = vrot.slane %v925_v9, %v3345_v5  ;;  %497 = vadd.xlane.f32.xlu0 %v496_v59  ;;  %v759_v57 = vpop.xlane.xlu1 %758  ;;  %2643 = vmatprep.subr.mxu1 %v1038_v41  ;;  %v1059_v59 = vld [vmem:[%s4672_s1 + $0x260] sm:$0xff] }
 0x171   :  { %v708_v54 = vpop.xlane.xlu0 %707  ;;  %v4174_v46 = vsel %vm1331_vm7, %v2058_v28, %v4046_v8  ;;  %v972_v61 = vmul.f32 0.015625, %v759_v57  ;;  %2644 = vmatpush3.msra.mxu1 %v1022_v4  ;;  %v1077_v8 = vld [vmem:[%s4672_s1 + $0x2f0] sm:$0xff]  ;;  %v100_v57 = vld [vmem:[%s4671_s0 + $0x278] sm:$0xff] }
 0x172   :  { %v4178_v42 = vsel %vm1324_vm6, %v1974_v39, %v4049_v18  ;;  %v955_v1 = vmul.f32 0.015625, %v708_v54  ;;  %2645 = vmatprep.subr.mxu1 %v1037_v31  ;;  %v1021_v18 = vld [vmem:[%s4672_s1 + $0x130] sm:$0xff]  ;;  %2664 = vmatprep.subr.mxu0 %v1077_v8  ;;  %v451_v40 = vsel %vm213_vm0, %v100_v57, 0.0 }
 0x173   :  { %v2206_v33 = vrot.slane %v972_v61, %v4693_v45  ;;  %785 = vadd.xlane.f32.xlu1 %v784_v0  ;;  %2646 = vmatpush3.msra.mxu1 %v1021_v18  ;;  %v1033_v54 = vld [vmem:[%s4672_s1 + $0x190] sm:$0xff] }
 0x174   :  { %v2122_v7 = vrot.slane %v955_v1, %v4692_v32  ;;  %734 = vadd.xlane.f32.xlu0 %v733_v36  ;;  %v384_v24 = vpop.xlane.xlu1 %383  ;;  %v1020_v32 = vld [vmem:[%s4672_s1 + $0x128] sm:$0xff]  ;;  %2665 = vmatpush3.msra.mxu0 %v1061_v62  ;;  %v1017_v4 = vld [vmem:[%s4672_s1 + $0x110] sm:$0xff]  ;;  %v739_v1 = vsel %vm213_vm0, %v196_v38, 0.0  ;;  %vm4695_vm0 = vmmov %vm4694_vm1 }
 0x175   :  { %v333_v3 = vpop.xlane.xlu0 %332  ;;  %v4213_v51 = vsel %vm1317_vm5, %v2206_v33, %v4075_v14  ;;  %v847_v50 = vmul.f32 0.015625, %v384_v24  ;;  %2647 = vmatprep.subr.mxu1 %v1036_v15  ;;  %v1035_v14 = vld [vmem:[%s4672_s1 + $0x1a0] sm:$0xff]  ;;  %2666 = vmatprep.subr.mxu0 %v1076_v16  ;;  %v1057_v31 = vld [vmem:[%s4672_s1 + $0x250] sm:$0xff]  ;;  %v1072_v15 = vld [vmem:[%s4672_s1 + $0x2c8] sm:$0xff] }
 0x176   :  { %v4217_v37 = vsel %vm1310_vm4, %v2122_v7, %v4079_v49  ;;  %v830_v52 = vmul.f32 0.015625, %v333_v3  ;;  %2648 = vmatpush3.msra.mxu1 %v1020_v32  ;;  %v1075_v49 = vld [vmem:[%s4672_s1 + $0x2e0] sm:$0xff]  ;;  %2667 = vmatpush3.msra.mxu0 %v1060_v34  ;;  %v1032_v7 = vld [vmem:[%s4672_s1 + $0x188] sm:$0xff]  ;;  %vm4696_vm2 = vmmov %vm4695_vm0 }
 0x177   :  { %v1589_v30 = vrot.slane %v847_v50, %v3518_v6  ;;  %500 = vadd.xlane.f32.xlu1 %v499_v44  ;;  %2649 = vmatprep.subr.mxu1 %v1035_v14  ;;  %v1056_v24 = vld [vmem:[%s4672_s1 + $0x248] sm:$0xff]  ;;  %v1031_v3 = vld [vmem:[%s4672_s1 + $0x180] sm:$0xff]  ;;  %vm4697_vm3 = vmmov %vm4695_vm0 }
 0x178   :  { %v1505_v60 = vrot.slane %v830_v52, %v3508_v63  ;;  %449 = vadd.xlane.f32.xlu0 %v448_v29  ;;  %v474_v17 = vpop.xlane.xlu1 %473  ;;  %2668 = vmatprep.subr.mxu0 %v1075_v49  ;;  %v1071_v32 = vld [vmem:[%s4672_s1 + $0x2c0] sm:$0xff]  ;;  %v1070_v49 = vld [vmem:[%s4672_s1 + $0x2b8] sm:$0xff]  ;;  %vm4698_vm4 = vmmov %vm4695_vm0 }
 0x179   :  { %v423_v9 = vpop.xlane.xlu0 %422  ;;  %v4249_v56 = vsel %vm4694_vm1, %v1589_v30, %v4105_v47  ;;  %v877_v39 = vmul.f32 0.015625, %v474_v17  ;;  %2650 = vmatpush3.msra.mxu1 %v1019_v13  ;;  %v1018_v47 = vld [vmem:[%s4672_s1 + $0x118] sm:$0xff]  ;;  %2669 = vmatpush3.msra.mxu0 %v1059_v59  ;;  %v1015_v34 = vld [vmem:[%s4672_s1 + $0x100] sm:$0xff]  ;;  %v1069_v59 = vld [vmem:[%s4672_s1 + $0x2b0] sm:$0xff] }
 0x17a   :  { %v4253_v28 = vsel %vm1331_vm7, %v1505_v60, %v4109_v25  ;;  %v860_v41 = vmul.f32 0.015625, %v423_v9  ;;  %2651 = vmatprep.subr.mxu1 %v1034_v12  ;;  %v1058_v25 = vld [vmem:[%s4672_s1 + $0x258] sm:$0xff]  ;;  %2670 = vmatprep.subr.mxu0 %v1074_v48  ;;  %v1055_v14 = vld [vmem:[%s4672_s1 + $0x240] sm:$0xff] }
 0x17b   :  { %v1737_v0 = vrot.slane %v877_v39, %v3345_v5  ;;  %788 = vadd.xlane.f32.xlu1 %v787_v20  ;;  %2652 = vmatpush3.msra.mxu1 %v1018_v47  ;;  %v1053_v20 = vld [vmem:[%s4672_s1 + $0x230] sm:$0xff]  ;;  %v1067_v38 = vld [vmem:[%s4672_s1 + $0x2a0] sm:$0xff] }
 0x17c   :  { %v1653_v36 = vrot.slane %v860_v41, %v4693_v45  ;;  %737 = vadd.xlane.f32.xlu0 %v736_v55  ;;  %v672_v53 = vpop.xlane.xlu1 %671  ;;  %2671 = vmatpush3.msra.mxu0 %v1058_v25  ;;  %v1068_v55 = vld [vmem:[%s4672_s1 + $0x2a8] sm:$0xff] }
 0x17d   :  { %v621_v61 = vpop.xlane.xlu0 %620  ;;  %v4285_v8 = vsel %vm1324_vm6, %v1737_v0, %v4135_v21  ;;  %v943_v62 = vmul.f32 0.015625, %v672_v53  ;;  %2653 = vmatprep.subr.mxu1 %v1033_v54  ;;  %2672 = vmatprep.subr.mxu0 %v1073_v10  ;;  %v1016_v21 = vld [vmem:[%s4672_s1 + $0x108] sm:$0xff]  ;;  %v1051_v0 = vld [vmem:[%s4672_s1 + $0x220] sm:$0xff] }
 0x17e   :  { %v4289_v18 = vsel %vm1317_vm5, %v1653_v36, %v4139_v11  ;;  %v926_v33 = vmul.f32 0.015625, %v621_v61  ;;  %2654 = vmatpush3.msra.mxu1 %v1017_v4  ;;  %2673 = vmatpush3.msra.mxu0 %v1057_v31  ;;  %v1066_v36 = vld [vmem:[%s4672_s1 + $0x298] sm:$0xff]  ;;  %v1065_v61 = vld [vmem:[%s4672_s1 + $0x290] sm:$0xff] }
 0x17f   :  { %v2063_v11 = vrot.slane %v943_v62, %v3518_v6  ;;  %740 = vadd.xlane.f32.xlu1 %v739_v1  ;;  %2655 = vmatprep.subr.mxu1 %v1032_v7  ;;  %v1064_v7 = vld [vmem:[%s4672_s1 + $0x288] sm:$0xff] }
 0x180   :  { %v1979_v16 = vrot.slane %v926_v33, %v3508_v63  ;;  %452 = vadd.xlane.f32.xlu0 %v451_v40  ;;  %v762_v44 = vpop.xlane.xlu1 %761  ;;  %2674 = vmatprep.subr.mxu0 %v1072_v15  ;;  %v1049_v33 = vld [vmem:[%s4672_s1 + $0x210] sm:$0xff] }
 0x181   :  { %v711_v29 = vpop.xlane.xlu0 %710  ;;  %v4316_v50 = vsel %vm4695_vm0, %v2063_v11, %v4174_v46  ;;  %v973_v58 = vmul.f32 0.015625, %v762_v44  ;;  %2656 = vmatpush3.msra.mxu1 %v1016_v21  ;;  %2675 = vmatpush3.msra.mxu0 %v1056_v24 }
 0x182   :  { %v4320_v52 = vsel %vm1331_vm7, %v1979_v16, %v4178_v42  ;;  %v956_v35 = vmul.f32 0.015625, %v711_v29  ;;  %2657 = vmatprep.subr.mxu1 %v1031_v3  ;;  %2676 = vmatprep.subr.mxu0 %v1071_v32  ;;  %v1054_v42 = vld [vmem:[%s4672_s1 + $0x238] sm:$0xff]  ;;  %v1063_v16 = vld [vmem:[%s4672_s1 + $0x280] sm:$0xff] }
 0x183   :  { %v2211_v46 = vrot.slane %v973_v58, %v3345_v5  ;;  %2658 = vmatpush3.msra.mxu1 %v1015_v34  ;;  %2677 = vmatpush3.msra.mxu0 %v1055_v14  ;;  %v1047_v32 = vld [vmem:[%s4672_s1 + $0x200] sm:$0xff]  ;;  %v2774_v34 = vmov 0.0  }
 0x184   :  { %v2127_v13 = vrot.slane %v956_v35, %v4693_v45  ;;  %v387_v30 = vpop.xlane.xlu1 %386  ;;  %2678 = vmatprep.subr.mxu0 %v1070_v49  ;;  %2714 = vmatprep.subr.mxu1 %v2774_v34 }
 0x185   :  { %v336_v60 = vpop.xlane.xlu0 %335  ;;  %v4338_v12 = vsel %vm1324_vm6, %v2211_v46, %v4213_v51  ;;  %v848_v17 = vmul.f32 0.015625, %v387_v30  ;;  %2679 = vmatpush3.msra.mxu0 %v1054_v42 }
 0x186   :  { %v4342_v45 = vsel %vm1317_vm5, %v2127_v13, %v4217_v37  ;;  %v831_v9 = vmul.f32 0.015625, %v336_v60  ;;  %2680 = vmatprep.subr.mxu0 %v1069_v59  ;;  %v1052_v37 = vld [vmem:[%s4672_s1 + $0x228] sm:$0xff]  ;;  %vm4699_vm5 = vmmov %vm4695_vm0 }
 0x187   :  { %v1594_v48 = vrot.slane %v848_v17, %v3534_v22  ;;  %2681 = vmatpush3.msra.mxu0 %v1053_v20 }
 0x188   :  { %v1510_v51 = vrot.slane %v831_v9, %v3518_v6  ;;  %v477_v39 = vpop.xlane.xlu1 %476  ;;  %2682 = vmatprep.subr.mxu0 %v1068_v55 }
 0x189   :  { %v426_v41 = vpop.xlane.xlu0 %425  ;;  %v1595_v57 = vsel %vm1345_vm9, %v1594_v48, %v4249_v56  ;;  %v878_v25 = vmul.f32 0.015625, %v477_v39  ;;  %2683 = vmatpush3.msra.mxu0 %v1052_v37  ;;  %v1050_v56 = vld [vmem:[%s4672_s1 + $0x218] sm:$0xff] }
 0x18a   :  { %v1511_v47 = vsel %vm4696_vm2, %v1510_v51, %v4253_v28  ;;  %v861_v54 = vmul.f32 0.015625, %v426_v41  ;;  %2684 = vmatprep.subr.mxu0 %v1067_v38 }
 0x18b   :  { %v1742_v10 = vrot.slane %v878_v25, %v3508_v63  ;;  %2685 = vmatpush3.msra.mxu0 %v1051_v0 }
 0x18c   :  { %v1658_v4 = vrot.slane %v861_v54, %v3345_v5  ;;  %v675_v28 = vpop.xlane.xlu1 %674  ;;  %2686 = vmatprep.subr.mxu0 %v1066_v36 }
 0x18d   :  { %v624_v53 = vpop.xlane.xlu0 %623  ;;  %v1743_v1 = vsel %vm1331_vm7, %v1742_v10, %v4285_v8  ;;  %v944_v31 = vmul.f32 0.015625, %v675_v28  ;;  %2687 = vmatpush3.msra.mxu0 %v1050_v56  ;;  %v1048_v8 = vld [vmem:[%s4672_s1 + $0x208] sm:$0xff] }
 0x18e   :  { %v1659_v40 = vsel %vm1324_vm6, %v1658_v4, %v4289_v18  ;;  %v927_v62 = vmul.f32 0.015625, %v624_v53  ;;  %2688 = vmatprep.subr.mxu0 %v1065_v61 }
 0x18f   :  { %v2068_v15 = vrot.slane %v944_v31, %v3534_v22  ;;  %2689 = vmatpush3.msra.mxu0 %v1049_v33 }
 0x190   :  { %v1984_v21 = vrot.slane %v927_v62, %v3518_v6  ;;  %v765_v18 = vpop.xlane.xlu1 %764  ;;  %2690 = vmatprep.subr.mxu0 %v1064_v7 }
 0x191   :  { %v714_v11 = vpop.xlane.xlu0 %713  ;;  %v2069_v24 = vsel %vm1345_vm9, %v2068_v15, %v4316_v50  ;;  %v974_v44 = vmul.f32 0.015625, %v765_v18  ;;  %2691 = vmatpush3.msra.mxu0 %v1048_v8 }
 0x192   :  { %v1985_v3 = vsel %vm4697_vm3, %v1984_v21, %v4320_v52  ;;  %v957_v29 = vmul.f32 0.015625, %v714_v11  ;;  %2692 = vmatprep.subr.mxu0 %v1063_v16 }
 0x193   :  { %v2216_v58 = vrot.slane %v974_v44, %v3508_v63  ;;  %2693 = vmatpush3.msra.mxu0 %v1047_v32 }
 0x194   :  { %v2132_v35 = vrot.slane %v957_v29, %v3345_v5  ;;  %v390_v50 = vpop.xlane.xlu1 %389 }
 0x195   :  { %v2217_v52 = vsel %vm1331_vm7, %v2216_v58, %v4338_v12  ;;  %v849_v49 = vmul.f32 0.015625, %v390_v50  ;;  %v339_v46 = vpop.xlane.xlu0 %338 }
 0x196   :  { %v2133_v14 = vsel %vm1324_vm6, %v2132_v35, %v4342_v45  ;;  %v832_v13 = vmul.f32 0.015625, %v339_v46  ;;  %vm4700_vm6 = vmmov %vm4695_vm0 }
 0x197   :  { %v1599_v42 = vrot.slane %v849_v49, %v3537_v23 }
 0x198   :  { %v1515_v30 = vrot.slane %v832_v13, %v3534_v22  ;;  %v480_v60 = vpop.xlane.xlu1 %479 }
 0x199   :  { %v1600_v59 = vsel %vm1352_vm10, %v1599_v42, %v1595_v57  ;;  %v879_v5 = vmul.f32 0.015625, %v480_v60  ;;  %v429_v17 = vpop.xlane.xlu0 %428 }
 0x19a   :  { %v1516_v9 = vsel %vm1345_vm9, %v1515_v30, %v1511_v47  ;;  %v862_v20 = vmul.f32 0.015625, %v429_v17 }
 0x19b   :  { %v1747_v12 = vrot.slane %v879_v5, %v3518_v6 }
 0x19c   :  { %v1663_v55 = vrot.slane %v862_v20, %v3508_v63  ;;  %v678_v45 = vpop.xlane.xlu1 %677 }
 0x19d   :  { %v1748_v48 = vsel %vm4698_vm4, %v1747_v12, %v1743_v1  ;;  %v945_v51 = vmul.f32 0.015625, %v678_v45  ;;  %v627_v37 = vpop.xlane.xlu0 %626 }
 0x19e   :  { %v1664_v39 = vsel %vm1331_vm7, %v1663_v55, %v1659_v40  ;;  %v928_v41 = vmul.f32 0.015625, %v627_v37 }
 0x19f   :  { %v2073_v38 = vrot.slane %v945_v51, %v3537_v23 }
 0x1a0   :  { %v1989_v57 = vrot.slane %v928_v41, %v3534_v22  ;;  %v768_v25 = vpop.xlane.xlu1 %767 }
 0x1a1   :  { %v4419_v47 = vsel %vm1352_vm10, %v2073_v38, %v2069_v24  ;;  %v975_v54 = vmul.f32 0.015625, %v768_v25  ;;  %v717_v0 = vpop.xlane.xlu0 %716 }
 0x1a2   :  { %v1990_v36 = vsel %vm1345_vm9, %v1989_v57, %v1985_v3  ;;  %v958_v10 = vmul.f32 0.015625, %v717_v0 }
 0x1a3   :  { %v2221_v4 = vrot.slane %v975_v54, %v3518_v6 }
 0x1a4   :  { %v2137_v56 = vrot.slane %v958_v10, %v3508_v63  ;;  %v393_v28 = vpop.xlane.xlu1 %392 }
 0x1a5   :  { %v2222_v53 = vsel %vm4699_vm5, %v2221_v4, %v2217_v52  ;;  %v850_v61 = vmul.f32 0.015625, %v393_v28  ;;  %v342_v1 = vpop.xlane.xlu0 %341 }
 0x1a6   :  { %v2138_v40 = vsel %vm1331_vm7, %v2137_v56, %v2133_v14  ;;  %v833_v31 = vmul.f32 0.015625, %v342_v1  ;;  %vm4701_vm7 = vmmov %vm4695_vm0 }
 0x1a7   :  { %v1604_v62 = vrot.slane %v850_v61, %v3540_v26 }
 0x1a8   :  { %v1520_v33 = vrot.slane %v833_v31, %v3537_v23  ;;  %v483_v7 = vpop.xlane.xlu1 %482 }
 0x1a9   :  { %v4429_v15 = vsel %vm1359_vm11, %v1604_v62, %v1600_v59  ;;  %v880_v21 = vmul.f32 0.015625, %v483_v7  ;;  %v432_v8 = vpop.xlane.xlu0 %431 }
 0x1aa   :  { %v4432_v63 = vsel %vm1352_vm10, %v1520_v33, %v1516_v9  ;;  %v863_v18 = vmul.f32 0.015625, %v432_v8 }
 0x1ab   :  { %v1752_v11 = vrot.slane %v880_v21, %v3534_v22 }
 0x1ac   :  { %v1668_v16 = vrot.slane %v863_v18, %v3518_v6  ;;  %v681_v24 = vpop.xlane.xlu1 %680 }
 0x1ad   :  { %v1753_v3 = vsel %vm1345_vm9, %v1752_v11, %v1748_v48  ;;  %v630_v44 = vpop.xlane.xlu0 %629  ;;  %v946_v21 = vmul.f32 0.015625, %v681_v24 }
 0x1ae   :  { %v1669_v29 = vsel %vm4700_vm6, %v1668_v16, %v1664_v39  ;;  %v929_v32 = vmul.f32 0.015625, %v630_v44 }
 0x1b0   :  { %v1994_v58 = vrot.slane %v929_v32, %v3537_v23  ;;  %v771_v35 = vpop.xlane.xlu1 %770 }
 0x1b1   :  { %v976_v50 = vmul.f32 0.015625, %v771_v35  ;;  %v720_v52 = vpop.xlane.xlu0 %719 }
 0x1b2   :  { %v4440_v14 = vsel %vm1352_vm10, %v1994_v58, %v1990_v36  ;;  %v959_v49 = vmul.f32 0.015625, %v720_v52  ;;  %v2078_v58 = vrot.slane %v946_v21, %v3540_v26 }
 0x1b3   :  { %v2226_v46 = vrot.slane %v976_v50, %v3534_v22 }
 0x1b4   :  { %v2142_v13 = vrot.slane %v959_v49, %v3518_v6  ;;  %v396_v42 = vpop.xlane.xlu1 %395 }
 0x1b5   :  { %v4445_v30 = vsel %vm1345_vm9, %v2226_v46, %v2222_v53  ;;  %v4447_v60 = vpop.xlane.xlu0 %344  ;;  %v851_v18 = vmul.f32 0.015625, %v396_v42 }
 0x1b6   :  { %v2143_v59 = vsel %vm4701_vm7, %v2142_v13, %v2138_v40 }
 0x1b7   :  { %v1609_v52 = vrot.slane %v851_v18, %v3543_v27 }
 0x1b8   :  { %v486_v5 = vpop.xlane.xlu1 %485 }
 0x1b9   :  { %v881_v17 = vmul.f32 0.015625, %v486_v5  ;;  %v435_v9 = vpop.xlane.xlu0 %434  ;;  %v2079_v5 = vsel %vm1359_vm11, %v2078_v58, %v4419_v47 }
 0x1ba   :  { %v864_v20 = vmul.f32 0.015625, %v435_v9 }
 0x1bb   :  { %v1757_v12 = vrot.slane %v881_v17, %v3537_v23 }
 0x1bc   :  { %v1673_v55 = vrot.slane %v864_v20, %v3534_v22  ;;  %v684_v45 = vpop.xlane.xlu1 %683 }
 0x1bd   :  { %v4453_v48 = vsel %vm1352_vm10, %v1757_v12, %v1753_v3  ;;  %v633_v6 = vpop.xlane.xlu0 %632  ;;  %v947_v11 = vmul.f32 0.015625, %v684_v45  ;;  %v1610_v12 = vsel %vm1366_vm12, %v1609_v52, %v4429_v15 }
 0x1be   :  { %v4456_v51 = vsel %vm1345_vm9, %v1673_v55, %v1669_v29 }
 0x1bf   :  { %v2083_v49 = vrot.slane %v947_v11, %v3543_v27 }
 0x1c0   :  { %v4458_v37 = vpop.xlane.xlu1 %773 }
 0x1c1   :  { %v723_v39 = vpop.xlane.xlu0 %722  ;;  %v2084_v55 = vsel %vm1366_vm12, %v2083_v49, %v2079_v5  ;;  %v977_v52 = vmul.f32 0.015625, %v4458_v37 }
 0x1c2   :  { %v960_v41 = vmul.f32 0.015625, %v723_v39 }
 0x1c4   :  { %v2147_v38 = vrot.slane %v960_v41, %v3534_v22  ;;  %v399_v57 = vpop.xlane.xlu1 %398 }
 0x1c5   :  { %v348_v25 = vpop.xlane.xlu0 %347  ;;  %v852_v16 = vmul.f32 0.015625, %v399_v57 }
 0x1c6   :  { %v4462_v54 = vsel %vm1345_vm9, %v2147_v38, %v2143_v59  ;;  %v834_v38 = vmul.f32 0.015625, %v4447_v60  ;;  %v835_v21 = vmul.f32 0.015625, %v348_v25 }
 0x1c7   :  { %v1614_v24 = vrot.slane %v852_v16, %v3563_v19 }
 0x1c8   :  { %v4464_v0 = vpop.xlane.xlu1 %488  ;;  %v1525_v60 = vrot.slane %v834_v38, %v3540_v26  ;;  %v1530_v49 = vrot.slane %v835_v21, %v3543_v27 }
 0x1c9   :  { %v4466_v36 = vpop.xlane.xlu0 %437  ;;  %v1615_v39 = vsel %vm1373_vm13, %v1614_v24, %v1610_v12 }
 0x1cc   :  { %v687_v10 = vpop.xlane.xlu1 %686 }
 0x1cd   :  { %v636_v4 = vpop.xlane.xlu0 %635  ;;  %v948_v3 = vmul.f32 0.015625, %v687_v10 }
 0x1ce   :  { %v931_v18 = vmul.f32 0.015625, %v636_v4 }
 0x1cf   :  { %v2088_v46 = vrot.slane %v948_v3, %v3563_v19 }
 0x1d0   :  { %v4468_v56 = vpop.xlane.xlu1 %776  ;;  %v2004_v25 = vrot.slane %v931_v18, %v3543_v27  ;;  %v2497_v18 = vld [vmem:[%s4674_s3 + $0x78] sm:$0xff] }
 0x1d1   :  { %v4470_v28 = vpop.xlane.xlu0 %725  ;;  %v2089_v41 = vsel %vm1373_vm13, %v2088_v46, %v2084_v55  ;;  %v865_v46 = vmul.f32 0.015625, %v4466_v36  ;;  %v978_v5 = vmul.f32 0.015625, %v4468_v56 }
 0x1d2   :  { %v961_v12 = vmul.f32 0.015625, %v4470_v28 }
 0x1d4   :  { %v402_v53 = vpop.xlane.xlu1 %401 }
 0x1d5   :  { %v351_v61 = vpop.xlane.xlu0 %350  ;;  %v853_v44 = vmul.f32 0.015625, %v402_v53  ;;  %v930_v53 = vmul.f32 0.015625, %v633_v6 }
 0x1d6   :  { %v836_v16 = vmul.f32 0.015625, %v351_v61  ;;  %v882_v61 = vmul.f32 0.015625, %v4464_v0 }
 0x1d7   :  { %v1619_v13 = vrot.slane %v853_v44, %v3581_v2  ;;  %v1999_v6 = vrot.slane %v930_v53, %v3540_v26  ;;  %v2236_v53 = vrot.slane %v978_v5, %v3540_v26 }
 0x1d8   :  { %v4472_v1 = vpop.xlane.xlu1 %491  ;;  %v1762_v55 = vrot.slane %v882_v61, %v3540_v26 }
 0x1d9   :  { %v4474_v22 = vpop.xlane.xlu0 %440  ;;  %v1620_v47 = vsel %vm1380_vm14, %v1619_v13, %v1615_v39  ;;  %v1678_v39 = vrot.slane %v865_v46, %v3537_v23 }
 0x1dc   :  { %v690_v40 = vpop.xlane.xlu1 %689 }
 0x1dd   :  { %v639_v31 = vpop.xlane.xlu0 %638  ;;  %v949_v29 = vmul.f32 0.015625, %v690_v40 }
 0x1de   :  { %v932_v3 = vmul.f32 0.015625, %v639_v31  ;;  %v1535_v31 = vrot.slane %v836_v16, %v3563_v19 }
 0x1df   :  { %v2093_v42 = vrot.slane %v949_v29, %v3581_v2 }
 0x1e0   :  { %v4476_v62 = vpop.xlane.xlu1 %779  ;;  %v2009_v24 = vrot.slane %v932_v3, %v3563_v19 }
 0x1e1   :  { %v4478_v33 = vpop.xlane.xlu0 %728  ;;  %v2094_v10 = vsel %vm1380_vm14, %v2093_v42, %v2089_v41  ;;  %v883_v41 = vmul.f32 0.015625, %v4472_v1  ;;  %v979_v28 = vmul.f32 0.015625, %v4476_v62  ;;  %v2152_v1 = vrot.slane %v961_v12, %v3537_v23 }
 0x1e2   :  { %v866_v62 = vmul.f32 0.015625, %v4474_v22 }
 0x1e4   :  { %v405_v7 = vpop.xlane.xlu1 %404 }
 0x1e5   :  { %v354_v8 = vpop.xlane.xlu0 %353  ;;  %v854_v35 = vmul.f32 0.015625, %v405_v7 }
 0x1e6   :  { %v837_v44 = vmul.f32 0.015625, %v354_v8  ;;  %v1526_v8 = vsel %vm1359_vm11, %v1525_v60, %v4432_v63 }
 0x1e7   :  { %v1624_v17 = vrot.slane %v854_v35, %v3608_v43  ;;  %v1531_v63 = vsel %vm1366_vm12, %v1530_v49, %v1526_v8 }
 0x1e8   :  { %v4480_v32 = vpop.xlane.xlu1 %494  ;;  %v1540_v13 = vrot.slane %v837_v44, %v3581_v2 }
 0x1e9   :  { %v4483_v50 = vpop.xlane.xlu0 %443  ;;  %v1625_v15 = vsel %vm1387_vm15, %v1624_v17, %v1620_v47  ;;  %v884_v60 = vmul.f32 0.015625, %v4480_v32  ;;  %v2241_v32 = vrot.slane %v979_v28, %v3543_v27 }
 0x1ea   :  { %v867_v61 = vmul.f32 0.015625, %v4483_v50 }
 0x1ec   :  { %v693_v59 = vpop.xlane.xlu1 %692 }
 0x1ed   :  { %v950_v9 = vmul.f32 0.015625, %v693_v59  ;;  %v642_v20 = vpop.xlane.xlu0 %641  ;;  %v2000_v59 = vsel %vm1359_vm11, %v1999_v6, %v4440_v14 }
 0x1ee   :  { %v933_v29 = vmul.f32 0.015625, %v642_v20  ;;  %v2231_v20 = vrot.slane %v977_v52, %v3537_v23  ;;  %v2005_v36 = vsel %vm1366_vm12, %v2004_v25, %v2000_v59  ;;  %v1763_v23 = vsel %vm1359_vm11, %v1762_v55, %v4453_v48  ;;  %v2495_v48 = vld [vmem:[%s4674_s3 + $0x68] sm:$0xff] }
 0x1ef   :  { %v2098_v45 = vrot.slane %v950_v9, %v3608_v43  ;;  %v2010_v14 = vsel %vm1373_vm13, %v2009_v24, %v2005_v36  ;;  %v2153_v25 = vsel %vm1352_vm10, %v2152_v1, %v4462_v54  ;;  %v1772_v24 = vrot.slane %v884_v60, %v3563_v19 }
 0x1f0   :  { %v783_v57 = vpop.xlane.xlu1 %782  ;;  %v2014_v37 = vrot.slane %v933_v29, %v3581_v2  ;;  %v2232_v3 = vsel %vm1352_vm10, %v2231_v20, %v4445_v30  ;;  %v2496_v29 = vld [vmem:[%s4674_s3 + $0x70] sm:$0xff]  ;;  %v1679_v30 = vsel %vm1352_vm10, %v1678_v39, %v4456_v51 }
 0x1f1   :  { %v4503_v40 = vpop.xlane.xlu0 %731  ;;  %v2099_v7 = vsel %vm1387_vm15, %v2098_v45, %v2094_v10  ;;  %v1536_v45 = vsel %vm1373_vm13, %v1535_v31, %v1531_v63  ;;  %v980_v44 = vmul.f32 0.015625, %v783_v57  ;;  %v2237_v22 = vsel %vm1359_vm11, %v2236_v53, %v2232_v3 }
 0x1f2   :  { %v2262_v11 = vsel %vm2258_vm8, %v2099_v7, %v1625_v15  ;;  %v1541_v47 = vsel %vm1380_vm14, %v1540_v13, %v1536_v45  ;;  %v2015_v10 = vsel %vm1380_vm14, %v2014_v37, %v2010_v14  ;;  %v963_v51 = vmul.f32 0.015625, %v4503_v40 }
 0x1f3   :  { %2405 = vmatprep.mubr.f32.mxu1 %v2262_v11  ;;  %v962_v11 = vmul.f32 0.015625, %v4478_v33  ;;  %v1767_v33 = vrot.slane %v883_v41, %v3543_v27  ;;  %v1683_v31 = vrot.slane %v866_v62, %v3540_v26  ;;  %v2246_v8 = vrot.slane %v980_v44, %v3563_v19 }
 0x1f4   :  { %v4509_v58 = vpop.xlane.xlu1 %446  ;;  %v2242_v40 = vsel %vm1366_vm12, %v2241_v32, %v2237_v22  ;;  %v2486_v22 = vld [vmem:[%s4674_s3 + $0x20] sm:$0xff]  ;;  %v2485_v32 = vld [vmem:[%s4674_s3 + $0x18] sm:$0xff] }
 0x1f5   :  { %v357_v35 = vpop.xlane.xlu0 %356  ;;  %v1768_v13 = vsel %vm1366_vm12, %v1767_v33, %v1763_v23  ;;  %v868_v54 = vmul.f32 0.015625, %v4509_v58  ;;  %v2162_v58 = vrot.slane %v963_v51, %v3543_v27  ;;  %v2247_v36 = vsel %vm1373_vm13, %v2246_v8, %v2242_v40  ;;  %v2492_v23 = vld [vmem:[%s4674_s3 + $0x50] sm:$0xff]  ;;  %v2491_v33 = vld [vmem:[%s4674_s3 + $0x48] sm:$0xff] }
 0x1f6   :  { %v838_v4 = vmul.f32 0.015625, %v357_v35  ;;  %v1773_v63 = vsel %vm1373_vm13, %v1772_v24, %v1768_v13  ;;  %v1684_v28 = vsel %vm1359_vm11, %v1683_v31, %v1679_v30  ;;  %v2487_v30 = vld [vmem:[%s4674_s3 + $0x28] sm:$0xff]  ;;  %v2590_v24 = vld [vmem:[%s4673_s2] ss:$0 sm:$0xff]  ;;  %s2752_s2 = scalar_lea.vmem %s2583_s24, 32 }
 0x1f7   :  { %v1693_v45 = vrot.slane %v868_v54, %v3563_v19  ;;  %p2753_p0 = scmp.ne.s32.totalorder %s2583_s24, %s2752_s2  ;;  %p2758_p2 = scmp.lt.s32.totalorder %s2752_s2, %s2752_s2 }
 0x1f8   :  { %v645_v42 = vpop.xlane.xlu1 %644  ;;  %v1545_v0 = vrot.slane %v838_v4, %v3608_v43  ;;  %v2157_v4 = vrot.slane %v962_v11, %v3540_v26 }
 0x1f9   :  { %v934_v17 = vmul.f32 0.015625, %v645_v42  ;;  %v498_v9 = vpop.xlane.xlu0 %497  ;;  %p2759_p3 = por %p2758_p2, %p2757_p1 }
 0x1fa   :  { %v1546_v7 = vsel %vm1387_vm15, %v1545_v0, %v1541_v47  ;;  %v885_v6 = vmul.f32 0.015625, %v498_v9  ;;  %v1688_v9 = vrot.slane %v867_v61, %v3543_v27 }
 0x1fb   :  { %v2019_v56 = vrot.slane %v934_v17, %v3608_v43  ;;  %v2158_v17 = vsel %vm1359_vm11, %v2157_v4, %v2153_v25  ;;  %v2624_v25 = vpop.f32.mrf.mxu0  ;;  %p2760_p4 = pnand %p2759_p3, %p2753_p0 }
 0x1fc   :  { %v786_v38 = vpop.xlane.xlu1 %785  ;;  %v1777_v37 = vrot.slane %v885_v6, %v3581_v2  ;;  %v2490_v6 = vld [vmem:[%s4674_s3 + $0x40] sm:$0xff] }
 0x1fd   :  { %v735_v15 = vpop.xlane.xlu0 %734  ;;  %v2020_v21 = vsel %vm1387_vm15, %v2019_v56, %v2015_v10  ;;  %v981_v35 = vmul.f32 0.015625, %v786_v38  ;;  %v2625_v61 = vpop.f32.mrf.mxu0 }
 0x1fe   :  { %v2261_v16 = vsel %vm2258_vm8, %v2020_v21, %v1546_v7  ;;  %v964_v46 = vmul.f32 0.015625, %v735_v15  ;;  %v1778_v39 = vsel %vm1380_vm14, %v1777_v37, %v1773_v63  ;;  %v2163_v15 = vsel %vm1366_vm12, %v2162_v58, %v2158_v17 }
 0x1ff   :  { %2406 = vmatmul.mubr.f32.vlgmr.msra.gmra.mxu1 %v2261_v16  ;;  %v2251_v50 = vrot.slane %v981_v35, %v3581_v2  ;;  %v1689_v21 = vsel %vm1366_vm12, %v1688_v9, %v1684_v28  ;;  %v2489_v35 = vld [vmem:[%s4674_s3 + $0x38] sm:$0xff]  ;;  %v2626_v31 = vadd.f32 %v2625_v61, %v2624_v25 }
 0x200   :  { %v501_v52 = vpop.xlane.xlu1 %500  ;;  %2715 = vmatpush3.msra.mxu1 %v2497_v18  ;;  %v2167_v12 = vrot.slane %v964_v46, %v3563_v19 }
 0x201   :  { %v886_v57 = vmul.f32 0.015625, %v501_v52  ;;  %v450_v49 = vpop.xlane.xlu0 %449  ;;  %2716 = vmatprep.subr.mxu1 %v2774_v34  ;;  %v2252_v41 = vsel %vm1380_vm14, %v2251_v50, %v2247_v36  ;;  %v2488_v52 = vld [vmem:[%s4674_s3 + $0x30] sm:$0xff]  ;;  %v2338_v13 = vadd.f32 %v2626_v31, %v2590_v24 }
 0x202   :  { %2717 = vmatpush3.msra.mxu1 %v2496_v29  ;;  %v869_v59 = vmul.f32 0.015625, %v450_v49  ;;  %v2168_v18 = vsel %vm1373_vm13, %v2167_v12, %v2163_v15  ;;  %v2494_v29 = vld [vmem:[%s4674_s3 + $0x60] sm:$0xff]  ;;  %v2483_v49 = vld [vmem:[%s4674_s3 + $0x8] sm:$0xff] }
 0x203   :  { %2718 = vmatprep.subr.mxu1 %v2774_v34  ;;  %v1782_v26 = vrot.slane %v886_v57, %v3608_v43  ;;  %v2484_v57 = vld [vmem:[%s4674_s3 + $0x10] sm:$0xff] }
 0x204   :  { %v789_v42 = vpop.xlane.xlu1 %788  ;;  %2719 = vmatpush3.msra.mxu1 %v2495_v48  ;;  %v1698_v27 = vrot.slane %v869_v59, %v3581_v2  ;;  %v2482_v48 = vld [vmem:[%s4674_s3] sm:$0xff] }
 0x205   :  { %v982_v5 = vmul.f32 0.015625, %v789_v42  ;;  %v738_v0 = vpop.xlane.xlu0 %737  ;;  %2720 = vmatprep.subr.mxu1 %v2774_v34  ;;  %v1783_v10 = vsel %vm1387_vm15, %v1782_v26, %v1778_v39 }
 0x206   :  { %v965_v20 = vmul.f32 0.015625, %v738_v0  ;;  %2721 = vmatpush3.msra.mxu1 %v2494_v29 }
 0x207   :  { %v2256_v55 = vrot.slane %v982_v5, %v3608_v43  ;;  %2722 = vmatprep.subr.mxu1 %v2774_v34 }
 0x208   :  { %v2172_v14 = vrot.slane %v965_v20, %v3581_v2  ;;  %v741_v56 = vpop.xlane.xlu1 %740  ;;  %v1694_v2 = vsel %vm1373_vm13, %v1693_v45, %v1689_v21 }
 0x209   :  { %v966_v38 = vmul.f32 0.015625, %v741_v56  ;;  %v453_v47 = vpop.xlane.xlu0 %452  ;;  %v2257_v53 = vsel %vm1387_vm15, %v2256_v55, %v2252_v41  ;;  %v1699_v3 = vsel %vm1380_vm14, %v1698_v27, %v1694_v2 }
 0x20a   :  { %v870_v19 = vmul.f32 0.015625, %v453_v47  ;;  %v2264_v7 = vsel %vm2258_vm8, %v2257_v53, %v1783_v10  ;;  %v2173_v11 = vsel %vm1380_vm14, %v2172_v14, %v2168_v18 }
 0x20b   :  { %v2177_v1 = vrot.slane %v966_v38, %v3608_v43  ;;  %2475 = vmatprep.mubr.f32.mxu0 %v2264_v7 }
 0x20c   :  { %v1703_v16 = vrot.slane %v870_v19, %v3608_v43  ;;  %v2493_v43 = vld [vmem:[%s4674_s3 + $0x58] sm:$0xff] }
 0x20d   :  { %v2178_v62 = vsel %vm1387_vm15, %v2177_v1, %v2173_v11  ;;  %2723 = vmatpush3.msra.mxu1 %v2493_v43 }
 0x20e   :  { %v1704_v60 = vsel %vm1387_vm15, %v1703_v16, %v1699_v3  ;;  %2724 = vmatprep.subr.mxu1 %v2774_v34 }
 0x20f   :  { %v2263_v44 = vsel %vm2258_vm8, %v2178_v62, %v1704_v60  ;;  %2725 = vmatpush3.msra.mxu1 %v2492_v23  ;;  %vm2775_vm8 = vmmov 0  }
 0x210   :  { %2476 = vmatmul.mubr.f32.vlgmr.msra.gmra.mxu0 %v2263_v44  ;;  %2726 = vmatprep.subr.mxu1 %v2774_v34 }
 0x211   :  { %2727 = vmatpush3.msra.mxu1 %v2491_v33  ;;  %2746 = vmatprep.mubr.msk.f32.mxu1 %vm2775_vm8, %v2774_v34 }
 0x212   :  { %2728 = vmatprep.subr.mxu1 %v2774_v34 }
 0x213   :  { %2729 = vmatpush3.msra.mxu1 %v2490_v6 }
 0x214   :  { %2730 = vmatprep.subr.mxu1 %v2774_v34 }
 0x215   :  { %2731 = vmatpush3.msra.mxu1 %v2489_v35 }
 0x216   :  { %2732 = vmatprep.subr.mxu1 %v2774_v34 }
 0x217   :  { %2733 = vmatpush3.msra.mxu1 %v2488_v52 }
 0x218   :  { %2734 = vmatprep.subr.mxu1 %v2774_v34 }
 0x219   :  { %2735 = vmatpush3.msra.mxu1 %v2487_v30 }
 0x21a   :  { %2736 = vmatprep.subr.mxu1 %v2774_v34 }
 0x21b   :  { %2737 = vmatpush3.msra.mxu1 %v2486_v22 }
 0x21c   :  { %2738 = vmatprep.subr.mxu1 %v2774_v34 }
 0x21d   :  { %2739 = vmatpush3.msra.mxu1 %v2485_v32 }
 0x21e   :  { %2740 = vmatprep.subr.mxu1 %v2774_v34 }
 0x21f   :  { %2741 = vmatpush3.msra.mxu1 %v2484_v57 }
 0x220   :  { %2742 = vmatprep.subr.mxu1 %v2774_v34 }
 0x221   :  { %2743 = vmatpush3.msra.mxu1 %v2483_v49 }
 0x222   :  { %2744 = vmatprep.subr.mxu1 %v2774_v34  ;;  %v2591_v34 = vld [vmem:[%s4675_s4] ss:$0 sm:$0xff] }
 0x223   :  { %2745 = vmatpush3.msra.mxu1 %v2482_v48 }
 0x2bf   :  { %v2659_v4 = vpop.f32.mrf.mxu1 }
 0x2c1   :  { %v2660_v51 = vpop.f32.mrf.mxu1 }
 0x2c2   :  { %v2661_v8 = vadd.f32 %v2660_v51, %v2659_v4 }
 0x2c4   :  { %v2408_v37 = vadd.f32 %v2661_v8, %v2338_v13 }
 0x2d0   :  { %v2694_v46 = vpop.f32.mrf.mxu0 }
 0x2d2   :  { %v2695_v54 = vpop.f32.mrf.mxu0 }
 0x2d3   :  { %v2696_v50 = vadd.f32 %v2695_v54, %v2694_v46 }
 0x2d5   :  { %v2478_v42 = vadd.f32 %v2696_v50, %v2408_v37 }
 0x2d7   :  { %v2481_v40 = vmax.f32 %v2478_v42, 0.0 }
 0x2d9   :  { %2747 = vmatmul.mubr.f32.vlgmr.msra.gmra.mxu1 %v2481_v40 }
 0x399   :  { %v2571_v26 = vpop.f32.mrf.mxu1 }
 0x39a   :  { %v2572_v59 = vadd.f32 %v2591_v34, %v2571_v26 }
 0x39b   :  { %v2748_v5 = vpop.f32.mrf.mxu1 }
 0x39c   :  { %2575 = vst [vmem:[#allocation2] sm:$0x3] %v2572_v59 }
 0x39d   :  { %2763 = shalt.err (!%p2760_p4)
}
 0x39e   :  { %2585 = dma.vmem_to_hbm [thread:$0]  %s2583_s24, 32, %s4676_s5, [#allocation3]  }
 0x39f   :  { %2772 = dma.done.wait [#allocation3], 32  }
 0x3a0   :  { %2773 = vsyncadd [#allocation3], 4294967264 }
 0x3a1   :  { %2589 = vsyncpa [#allocation3], 1 }

</bundles_post_ra>
